<compile_context>
chip_gen: v7x
topology: tpu7x:2x2x1
jax: 0.10.0
libtpu: 0.0.40
codegen_flags: <defaults>
</compile_context>

<pallas_src>
import functools

import jax
import jax.numpy as jnp
import numpy as np
from jax import lax
from jax.experimental import pallas as pl
from jax.experimental.pallas import tpu as pltpu

BN_EPS = 1e-5
DILATIONS = (1, 3, 9)
KERNEL_SIZE = 3

# (dilation, apply_relu, add_residual) for the 11 conv layers:
#   conv0, then 3 EncoderBlocks x ResidualUnits with dilations (1,3,9), then conv_last
LAYER_CFG = ([(1, True, False)]
             + [(d, True, True) for _ in range(3) for d in DILATIONS]
             + [(1, False, False)])
N_CONV_LAYERS = len(LAYER_CFG)                                   # 11
PAD_MAX = max(d for d, _, _ in LAYER_CFG) * (KERNEL_SIZE - 1)    # 18
# Live-window row offset: >= PAD_MAX, multiple of 8 (f32) and 16 (bf16) sublane
# tiles so every per-layer live-region load/store is aligned.
PAD_ALIGN = 32


# ----------------------------------------------------------------------------
# Fused whole-network kernel
# ----------------------------------------------------------------------------
def _inverter_kernel(x_ref, wconv_ref, scale_ref, shift_ref,
                     w1_ref, b1_ref, w2_ref, b2_ref, w3_ref, b3_ref,
                     o_ref, xpad_ref, *,
                     t, cin, hid, cout, ksize, n_row, n_lane, mxu_dtype):
    # x_ref:     (R*G, T, Cin)            MFCC block (R*G batch elements)
    # wconv_ref: (11*K, G*H, G*H)         per-tap block-diagonal conv weights
    # scale/shift_ref: (11, G*H)          folded BN scale / shift (bias folded)
    # w*/b*_ref: block-diag MLP weights / lane-tiled biases
    # o_ref:     (R*G, T, Cout)
    # xpad_ref:  (R*(PAD_ALIGN+T), G*H)   activation scratch, mxu_dtype.
    #   Row-group r owns rows [r*W, (r+1)*W) with W = PAD_ALIGN + T:
    #   halo rows [r*W, r*W+PAD_ALIGN) stay zero, live rows are the rest.
    HL = n_lane * hid                # packed lane width (<= 128)
    W = PAD_ALIGN + t                # per row-group window, multiple of 8
    L = n_row * W - PAD_ALIGN        # rows fed to every matmul
    f32 = jnp.float32

    # ---- per-step init: zero halos + conv0 channel pad, copy the MFCC in ----
    for r in range(n_row):
        xpad_ref[r * W: r * W + PAD_ALIGN, :] = jnp.zeros((PAD_ALIGN, HL), mxu_dtype)
        row0 = r * W + PAD_ALIGN
        for g in range(n_lane):
            b_idx = r * n_lane + g
            lane0 = g * hid
            xpad_ref[row0: row0 + t, lane0: lane0 + cin] = (
                x_ref[b_idx].astype(mxu_dtype))
            if cin < hid:  # zero the unused input-channel lanes for conv0
                xpad_ref[row0: row0 + t, lane0 + cin: lane0 + hid] = (
                    jnp.zeros((t, hid - cin), mxu_dtype))

    # ---- 11 causal conv layers, statically unrolled -------------------------
    for li, (dil, do_relu, do_res) in enumerate(LAYER_CFG):
        # K accumulated per-tap dots; tap kk reads x[t - (K-1-kk)*dil].
        # Halo rows supply the causal zeros; rows in the inter-group gap are
        # computed but never stored.
        acc = None
        x_prev = None
        for kk in range(ksize):
            off = (ksize - 1 - kk) * dil
            tap = xpad_ref[PAD_ALIGN - off: PAD_ALIGN - off + L, :]   # (L, HL)
            if off == 0:
                x_prev = tap                       # unshifted activation
            d = jnp.dot(tap, wconv_ref[li * ksize + kk],
                        preferred_element_type=f32)
            acc = d if acc is None else acc + d
        y = acc * scale_ref[li:li + 1, :] + shift_ref[li:li + 1, :]
        if do_relu:
            y = jnp.maximum(y, 0.0)
        if do_res:
            y = y + x_prev.astype(f32)
        # aligned writeback of each row-group's live window
        for r in range(n_row):
            row0 = r * W + PAD_ALIGN
            xpad_ref[row0: row0 + t, :] = y[r * W: r * W + t, :].astype(mxu_dtype)

    # ---- out_mlp: Linear-ReLU-Linear-ReLU-Linear ----------------------------
    h = xpad_ref[PAD_ALIGN: PAD_ALIGN + L, :]                         # mxu_dtype
    h = jnp.maximum(jnp.dot(h, w1_ref[...],
                            preferred_element_type=f32) + b1_ref[...], 0.0)
    h = jnp.maximum(jnp.dot(h.astype(mxu_dtype), w2_ref[...],
                            preferred_element_type=f32) + b2_ref[...], 0.0)
    y = jnp.dot(h.astype(mxu_dtype), w3_ref[...],
                preferred_element_type=f32) + b3_ref[...]             # (L, G*Cout)

    # unpack lane groups / row groups back to per-batch-element outputs
    for r in range(n_row):
        for g in range(n_lane):
            b_idx = r * n_lane + g
            o_ref[b_idx] = y[r * W: r * W + t,
                             g * cout: (g + 1) * cout].astype(o_ref.dtype)


# ----------------------------------------------------------------------------
# Wrapper: packing heuristics, block-diagonal expansion, pallas_call
# ----------------------------------------------------------------------------
def _block_diag(w, g):
    """(..., a, b) -> (..., g*a, g*b): g copies of w on the block diagonal."""
    if g == 1:
        return w
    a, b = w.shape[-2], w.shape[-1]
    eye = jnp.eye(g, dtype=w.dtype)
    out = jnp.einsum('ij,...ab->...iajb', eye, w)
    return out.reshape(*w.shape[:-2], g * a, g * b)


def _pick_packing(batch, t, hid):
    """Choose (G lane-groups, R row-groups) per grid step."""
    g_max = max(1, 128 // hid)
    g = 1
    for cand in range(1, g_max + 1):          # largest divisor of B with G*H<=128
        if batch % cand == 0:
            g = cand
    rows_total = batch // g
    r = 1
    for cand in range(1, rows_total + 1):     # grow M=R*T toward >=256, cap scratch
        if rows_total % cand == 0 and cand * (PAD_ALIGN + t) <= 4096:
            r = cand
            if cand * t >= 256:
                break
    return g, r


def inverter_forward(packed, mfcc, *, mxu_dtype=jnp.float32):
    """mfcc: [B, T, in_channels] -> ema: [B, T, out_channels] (one pallas_call)."""
    wconv, scales, shifts, w1, b1, w2, b2, w3, b3 = packed
    B, T, Cin = mfcc.shape
    n_layers, K, H, _ = wconv.shape
    Cout = w3.shape[-1]
    assert n_layers == N_CONV_LAYERS, (n_layers, N_CONV_LAYERS)
    assert T % 8 == 0, "time length must be a multiple of 8 (sublane aligned)"
    # TODO(synk): tile T with an 88-frame halo + vmem_limit_bytes for long audio.

    G, R = _pick_packing(B, T, H)
    HL = G * H
    n_steps = B // (G * R)
    # NOTE(v7x): for best megacore use keep n_steps even (or split the batch
    # axis with core-parallel semantics) once B is large enough.

    cast = lambda a: a.astype(mxu_dtype)
    wconv_p = cast(_block_diag(wconv, G)).reshape(n_layers * K, HL, HL)
    w1_p, w2_p, w3_p = cast(_block_diag(w1, G)), cast(_block_diag(w2, G)), cast(_block_diag(w3, G))
    scales_p = jnp.tile(scales, (1, G))       # BN math stays f32
    shifts_p = jnp.tile(shifts, (1, G))
    b1_p, b2_p, b3_p = (jnp.tile(b1, (1, G)), jnp.tile(b2, (1, G)),
                        jnp.tile(b3, (1, G)))

    kernel = functools.partial(_inverter_kernel, t=T, cin=Cin, hid=H, cout=Cout,
                               ksize=K, n_row=R, n_lane=G, mxu_dtype=mxu_dtype)

    def full_spec(shape):
        n = len(shape)
        return pl.BlockSpec(shape, lambda i: (0,) * n)   # constant -> VMEM-resident

    return pl.pallas_call(
        kernel,
        out_shape=jax.ShapeDtypeStruct((B, T, Cout), mfcc.dtype),
        grid=(n_steps,),
        in_specs=[
            pl.BlockSpec((R * G, T, Cin), lambda i: (i, 0, 0)),
            full_spec((n_layers * K, HL, HL)),
            full_spec((n_layers, HL)),
            full_spec((n_layers, HL)),
            full_spec((HL, HL)), full_spec((1, HL)),
            full_spec((HL, HL)), full_spec((1, HL)),
            full_spec((HL, G * Cout)), full_spec((1, G * Cout)),
        ],
        out_specs=pl.BlockSpec((R * G, T, Cout), lambda i: (i, 0, 0)),
        scratch_shapes=[pltpu.VMEM((R * (PAD_ALIGN + T), HL), mxu_dtype)],
        compiler_params=pltpu.CompilerParams(
            dimension_semantics=("parallel",)),
    )(mfcc, wconv_p, scales_p, shifts_p, w1_p, b1_p, w2_p, b2_p, w3_p, b3_p)


# ----------------------------------------------------------------------------
# Parameter packing (BN folding, conv0 channel padding); canonical per-layer form
# ----------------------------------------------------------------------------
def fold_bn(bias, bn_params):
    gamma, beta, mean, var = bn_params
    scale = gamma / jnp.sqrt(var + BN_EPS)
    shift = (bias - mean) * scale + beta
    return scale, shift


def pack_params(params, in_channels, hidden_dim):
    K, H = KERNEL_SIZE, hidden_dim
    assert in_channels <= hidden_dim, "conv0 channel-pad assumes Cin <= hidden"

    wconvs, scales, shifts = [], [], []

    w0, b0, bn0 = params["conv0"]                        # (K, Cin, H)
    w0p = jnp.pad(w0, ((0, 0), (0, H - in_channels), (0, 0)))   # Cin -> H lanes
    s0, t0 = fold_bn(b0, bn0)
    wconvs.append(w0p); scales.append(s0); shifts.append(t0)

    for (w, b, bn) in params["res"]:                     # 9 x (K, H, H)
        s, t = fold_bn(b, bn)
        wconvs.append(w); scales.append(s); shifts.append(t)

    wl, bl = params["conv_last"]                         # (K, H, H)
    wconvs.append(wl); scales.append(jnp.ones_like(bl)); shifts.append(bl)

    (w1, b1), (w2, b2), (w3, b3) = params["mlp"]
    return (jnp.stack(wconvs), jnp.stack(scales), jnp.stack(shifts),
            w1, b1.reshape(1, -1), w2, b2.reshape(1, -1), w3, b3.reshape(1, -1))


# ----------------------------------------------------------------------------
# Deterministic synthetic parameters
# ----------------------------------------------------------------------------
def init_params(key, in_channels, hidden_dim, out_channels, kernel_size):
    keys = iter(jax.random.split(key, 128))

    def conv_w(cin, cout):
        fan_in = cin * kernel_size
        return jax.random.normal(next(keys), (kernel_size, cin, cout),
                                 jnp.float32) / np.sqrt(fan_in)

    def vec(c, s=0.1):
        return s * jax.random.normal(next(keys), (c,), jnp.float32)

    def bn(c):
        gamma = 1.0 + 0.1 * jax.random.normal(next(keys), (c,), jnp.float32)
        beta = 0.1 * jax.random.normal(next(keys), (c,), jnp.float32)
        mean = 0.1 * jax.random.normal(next(keys), (c,), jnp.float32)
        var = jax.random.uniform(next(keys), (c,), jnp.float32, 0.5, 1.5)
        return (gamma, beta, mean, var)

    def lin(cin, cout):
        w = jax.random.normal(next(keys), (cin, cout), jnp.float32) / np.sqrt(cin)
        b = 0.1 * jax.random.normal(next(keys), (cout,), jnp.float32)
        return (w, b)

    return {
        "conv0": (conv_w(in_channels, hidden_dim), vec(hidden_dim), bn(hidden_dim)),
        "res": [(conv_w(hidden_dim, hidden_dim), vec(hidden_dim), bn(hidden_dim))
                for _ in range(9)],
        "conv_last": (conv_w(hidden_dim, hidden_dim), vec(hidden_dim)),
        "mlp": (lin(hidden_dim, hidden_dim), lin(hidden_dim, hidden_dim),
                lin(hidden_dim, out_channels)),
    }


# ----------------------------------------------------------------------------
# Pure-JAX reference (HIGHEST precision, mimicking PyTorch semantics)
# ----------------------------------------------------------------------------
def _ref_causal_conv(x_btc, w_kio, bias, dilation):
    x = jnp.transpose(x_btc, (0, 2, 1))                  # [B, C, T]  (NCW)
    w = jnp.transpose(w_kio, (2, 1, 0))                  # [Cout, Cin, K]
    pad = dilation * (w.shape[-1] - 1)
    y = lax.conv_general_dilated(x, w, window_strides=(1,), padding=[(pad, 0)],
                                 rhs_dilation=(dilation,),
                                 dimension_numbers=("NCH", "OIH", "NCH"),
                                 precision=lax.Precision.HIGHEST)
    y = y + bias[None, :, None]
    return jnp.transpose(y, (0, 2, 1))


def _ref_bn_relu(y, bn_params):
    gamma, beta, mean, var = bn_params
    return jnp.maximum((y - mean) / jnp.sqrt(var + BN_EPS) * gamma + beta, 0.0)


def inverter_ref(params, mfcc):
    w0, b0, bn0 = params["conv0"]
    h = _ref_bn_relu(_ref_causal_conv(mfcc, w0, b0, 1), bn0)
    for idx, (w, b, bn) in enumerate(params["res"]):
        d = DILATIONS[idx % 3]
        h = h + _ref_bn_relu(_ref_causal_conv(h, w, b, d), bn)
    wl, bl = params["conv_last"]
    h = _ref_causal_conv(h, wl, bl, 1)
    (w1, b1), (w2, b2), (w3, b3) = params["mlp"]
    hp = lax.Precision.HIGHEST
    h = jnp.maximum(jnp.dot(h, w1, precision=hp) + b1, 0.0)
    h = jnp.maximum(jnp.dot(h, w2, precision=hp) + b2, 0.0)
    return jnp.dot(h, w3, precision=hp) + b3


if __name__ == "__main__":
    B, T = 2, 16
    IN_CH, HID, OUT_CH = 24, 32, 12

    key = jax.random.PRNGKey(0)
    k_param, k_x, k_x8 = jax.random.split(key, 3)
    params = init_params(k_param, IN_CH, HID, OUT_CH, KERNEL_SIZE)
    mfcc = jax.random.normal(k_x, (B, T, IN_CH), jnp.float32)

    packed = pack_params(params, IN_CH, HID)
    ref = inverter_ref(params, mfcc)
    tol_scale = 1.0 + float(jnp.max(jnp.abs(ref)))

    # f32 MXU operands: tight tolerance (catches indexing / BN-fold / packing bugs).
    fwd_f32 = jax.jit(functools.partial(inverter_forward, mxu_dtype=jnp.float32))
    ema = jax.block_until_ready(fwd_f32(packed, mfcc))
    assert ema.shape == (B, T, OUT_CH), ema.shape
    err_f32 = float(jnp.max(jnp.abs(ema - ref)))
    assert err_f32 < 1e-3 * tol_scale, f"f32 mismatch: max abs err = {err_f32}"

    # bf16 MXU operands + bf16 activation scratch (f32 accumulation): looser tol.
    fwd_bf16 = jax.jit(functools.partial(inverter_forward, mxu_dtype=jnp.bfloat16))
    ema_bf16 = jax.block_until_ready(fwd_bf16(packed, mfcc))
    err_bf16 = float(jnp.max(jnp.abs(ema_bf16 - ref)))
    assert err_bf16 < 2e-1 * tol_scale, f"bf16 mismatch: max abs err = {err_bf16}"

    # Larger batch exercises the full lane-packing (G=4 -> 128 lanes) and the
    # multi-row-group (R>1) matmul path.
    mfcc8 = jax.random.normal(k_x8, (8, T, IN_CH), jnp.float32)
    ref8 = inverter_ref(params, mfcc8)
    ema8 = jax.block_until_ready(fwd_f32(packed, mfcc8))
    tol8 = 1.0 + float(jnp.max(jnp.abs(ref8)))
    err8 = float(jnp.max(jnp.abs(ema8 - ref8)))
    assert ema8.shape == (8, T, OUT_CH), ema8.shape
    assert err8 < 1e-3 * tol8, f"f32 (B=8) mismatch: max abs err = {err8}"

    print("KERNEL_OK")
</pallas_src>

<mosaic_0001>
module attributes {stable_mosaic.version = 11 : i64} {
  func.func @_inverter_kernel(%arg0: i32, %arg1: memref<2x16x24xf32, #tpu.memory_space<vmem>>, %arg2: memref<33x64x64xf32, #tpu.memory_space<vmem>>, %arg3: memref<11x64xf32, #tpu.memory_space<vmem>>, %arg4: memref<11x64xf32, #tpu.memory_space<vmem>>, %arg5: memref<64x64xf32, #tpu.memory_space<vmem>>, %arg6: memref<1x64xf32, #tpu.memory_space<vmem>>, %arg7: memref<64x64xf32, #tpu.memory_space<vmem>>, %arg8: memref<1x64xf32, #tpu.memory_space<vmem>>, %arg9: memref<64x24xf32, #tpu.memory_space<vmem>>, %arg10: memref<1x24xf32, #tpu.memory_space<vmem>>, %arg11: memref<2x16x12xf32, #tpu.memory_space<vmem>>, %arg12: memref<48x64xf32, #tpu.memory_space<vmem>>) attributes {dimension_semantics = [#tpu.dimension_semantics<parallel>], iteration_bounds = array<i64: 1>, scalar_prefetch = 0 : i64, scratch_operands = 1 : i64, tpu.core_type = #tpu.core_type<tc>, window_params = [{transform_indices = @transform_0, window_bounds = array<i64: 2, 16, 24>}, {pipeline_mode = #tpu.pipeline_mode<synchronous>, transform_indices = @transform_1, window_bounds = array<i64: 33, 64, 64>}, {pipeline_mode = #tpu.pipeline_mode<synchronous>, transform_indices = @transform_2, window_bounds = array<i64: 11, 64>}, {pipeline_mode = #tpu.pipeline_mode<synchronous>, transform_indices = @transform_3, window_bounds = array<i64: 11, 64>}, {pipeline_mode = #tpu.pipeline_mode<synchronous>, transform_indices = @transform_4, window_bounds = array<i64: 64, 64>}, {pipeline_mode = #tpu.pipeline_mode<synchronous>, transform_indices = @transform_5, window_bounds = array<i64: 1, 64>}, {pipeline_mode = #tpu.pipeline_mode<synchronous>, transform_indices = @transform_6, window_bounds = array<i64: 64, 64>}, {pipeline_mode = #tpu.pipeline_mode<synchronous>, transform_indices = @transform_7, window_bounds = array<i64: 1, 64>}, {pipeline_mode = #tpu.pipeline_mode<synchronous>, transform_indices = @transform_8, window_bounds = array<i64: 64, 24>}, {pipeline_mode = #tpu.pipeline_mode<synchronous>, transform_indices = @transform_9, window_bounds = array<i64: 1, 24>}, {transform_indices = @transform_10, window_bounds = array<i64: 2, 16, 12>}]} {
    %cst = arith.constant 0.000000e+00 : f32
    %0 = vector.broadcast %cst : f32 to vector<32x64xf32>
    %c0 = arith.constant 0 : index
    %c0_0 = arith.constant 0 : index
    %1 = vector.load %arg12[%c0, %c0_0] : memref<48x64xf32, #tpu.memory_space<vmem>>, vector<32x64xf32>
    tpu.vector_store %arg12[%c0, %c0_0], %0 {strides = array<i32>} : memref<48x64xf32, #tpu.memory_space<vmem>>, vector<32x64xf32>,
    %c0_1 = arith.constant 0 : index
    %c0_2 = arith.constant 0 : index
    %c0_3 = arith.constant 0 : index
    %2 = vector.load %arg1[%c0_1, %c0_2, %c0_3] : memref<2x16x24xf32, #tpu.memory_space<vmem>>, vector<1x16x24xf32>
    %3 = vector.shape_cast %2 : vector<1x16x24xf32> to vector<16x24xf32>
    %c32 = arith.constant 32 : index
    %c0_4 = arith.constant 0 : index
    %4 = vector.load %arg12[%c32, %c0_4] : memref<48x64xf32, #tpu.memory_space<vmem>>, vector<16x24xf32>
    tpu.vector_store %arg12[%c32, %c0_4], %3 {strides = array<i32>} : memref<48x64xf32, #tpu.memory_space<vmem>>, vector<16x24xf32>,
    %cst_5 = arith.constant 0.000000e+00 : f32
    %5 = vector.broadcast %cst_5 : f32 to vector<16x8xf32>
    %c32_6 = arith.constant 32 : index
    %c24 = arith.constant 24 : index
    %6 = vector.load %arg12[%c32_6, %c24] : memref<48x64xf32, #tpu.memory_space<vmem>>, vector<16x8xf32>
    tpu.vector_store %arg12[%c32_6, %c24], %5 {strides = array<i32>} : memref<48x64xf32, #tpu.memory_space<vmem>>, vector<16x8xf32>,
    %c1 = arith.constant 1 : index
    %c0_7 = arith.constant 0 : index
    %c0_8 = arith.constant 0 : index
    %7 = vector.load %arg1[%c1, %c0_7, %c0_8] : memref<2x16x24xf32, #tpu.memory_space<vmem>>, vector<1x16x24xf32>
    %8 = vector.shape_cast %7 : vector<1x16x24xf32> to vector<16x24xf32>
    %c32_9 = arith.constant 32 : index
    %c32_10 = arith.constant 32 : index
    %9 = vector.load %arg12[%c32_9, %c32_10] : memref<48x64xf32, #tpu.memory_space<vmem>>, vector<16x24xf32>
    tpu.vector_store %arg12[%c32_9, %c32_10], %8 {strides = array<i32>} : memref<48x64xf32, #tpu.memory_space<vmem>>, vector<16x24xf32>,
    %cst_11 = arith.constant 0.000000e+00 : f32
    %10 = vector.broadcast %cst_11 : f32 to vector<16x8xf32>
    %c32_12 = arith.constant 32 : index
    %c56 = arith.constant 56 : index
    %11 = vector.load %arg12[%c32_12, %c56] : memref<48x64xf32, #tpu.memory_space<vmem>>, vector<16x8xf32>
    tpu.vector_store %arg12[%c32_12, %c56], %10 {strides = array<i32>} : memref<48x64xf32, #tpu.memory_space<vmem>>, vector<16x8xf32>,
    %c30 = arith.constant 30 : index
    %c0_13 = arith.constant 0 : index
    %12 = vector.load %arg12[%c30, %c0_13] : memref<48x64xf32, #tpu.memory_space<vmem>>, vector<16x64xf32>
    %c0_14 = arith.constant 0 : index
    %c0_15 = arith.constant 0 : index
    %c0_16 = arith.constant 0 : index
    %13 = vector.load %arg2[%c0_14, %c0_15, %c0_16] : memref<33x64x64xf32, #tpu.memory_space<vmem>>, vector<1x64x64xf32>
    %14 = vector.shape_cast %13 : vector<1x64x64xf32> to vector<64x64xf32>
    %cst_17 = arith.constant dense<0.000000e+00> : vector<16x64xf32>
    %15 = tpu.matmul %12, %14, %cst_17 {dimension_numbers = #tpu.dot_dimension_numbers<[1], [0], [0], [1], [0, 0, 1, 1], [], []>} : vector<16x64xf32>, vector<64x64xf32>, vector<16x64xf32> -> vector<16x64xf32>
    %c31 = arith.constant 31 : index
    %c0_18 = arith.constant 0 : index
    %16 = vector.load %arg12[%c31, %c0_18] : memref<48x64xf32, #tpu.memory_space<vmem>>, vector<16x64xf32>
    %c1_19 = arith.constant 1 : index
    %c0_20 = arith.constant 0 : index
    %c0_21 = arith.constant 0 : index
    %17 = vector.load %arg2[%c1_19, %c0_20, %c0_21] : memref<33x64x64xf32, #tpu.memory_space<vmem>>, vector<1x64x64xf32>
    %18 = vector.shape_cast %17 : vector<1x64x64xf32> to vector<64x64xf32>
    %cst_22 = arith.constant dense<0.000000e+00> : vector<16x64xf32>
    %19 = tpu.matmul %16, %18, %cst_22 {dimension_numbers = #tpu.dot_dimension_numbers<[1], [0], [0], [1], [0, 0, 1, 1], [], []>} : vector<16x64xf32>, vector<64x64xf32>, vector<16x64xf32> -> vector<16x64xf32>
    %20 = arith.addf %15, %19 : vector<16x64xf32>
    %c32_23 = arith.constant 32 : index
    %c0_24 = arith.constant 0 : index
    %21 = vector.load %arg12[%c32_23, %c0_24] : memref<48x64xf32, #tpu.memory_space<vmem>>, vector<16x64xf32>
    %c2 = arith.constant 2 : index
    %c0_25 = arith.constant 0 : index
    %c0_26 = arith.constant 0 : index
    %22 = vector.load %arg2[%c2, %c0_25, %c0_26] : memref<33x64x64xf32, #tpu.memory_space<vmem>>, vector<1x64x64xf32>
    %23 = vector.shape_cast %22 : vector<1x64x64xf32> to vector<64x64xf32>
    %cst_27 = arith.constant dense<0.000000e+00> : vector<16x64xf32>
    %24 = tpu.matmul %21, %23, %cst_27 {dimension_numbers = #tpu.dot_dimension_numbers<[1], [0], [0], [1], [0, 0, 1, 1], [], []>} : vector<16x64xf32>, vector<64x64xf32>, vector<16x64xf32> -> vector<16x64xf32>
    %25 = arith.addf %20, %24 : vector<16x64xf32>
    %c0_28 = arith.constant 0 : index
    %c0_29 = arith.constant 0 : index
    %26 = vector.load %arg3[%c0_28, %c0_29] : memref<11x64xf32, #tpu.memory_space<vmem>>, vector<1x64xf32>
    %27 = vector.broadcast %26 : vector<1x64xf32> to vector<16x64xf32>
    %28 = arith.mulf %25, %27 : vector<16x64xf32>
    %c0_30 = arith.constant 0 : index
    %c0_31 = arith.constant 0 : index
    %29 = vector.load %arg4[%c0_30, %c0_31] : memref<11x64xf32, #tpu.memory_space<vmem>>, vector<1x64xf32>
    %30 = vector.broadcast %29 : vector<1x64xf32> to vector<16x64xf32>
    %31 = arith.addf %28, %30 : vector<16x64xf32>
    %cst_32 = arith.constant 0.000000e+00 : f32
    %32 = vector.broadcast %cst_32 : f32 to vector<16x64xf32>
    %33 = arith.maximumf %31, %32 : vector<16x64xf32>
    %c32_33 = arith.constant 32 : index
    %c0_34 = arith.constant 0 : index
    %34 = vector.load %arg12[%c32_33, %c0_34] : memref<48x64xf32, #tpu.memory_space<vmem>>, vector<16x64xf32>
    tpu.vector_store %arg12[%c32_33, %c0_34], %33 {strides = array<i32>} : memref<48x64xf32, #tpu.memory_space<vmem>>, vector<16x64xf32>,
    %c30_35 = arith.constant 30 : index
    %c0_36 = arith.constant 0 : index
    %35 = vector.load %arg12[%c30_35, %c0_36] : memref<48x64xf32, #tpu.memory_space<vmem>>, vector<16x64xf32>
    %c3 = arith.constant 3 : index
    %c0_37 = arith.constant 0 : index
    %c0_38 = arith.constant 0 : index
    %36 = vector.load %arg2[%c3, %c0_37, %c0_38] : memref<33x64x64xf32, #tpu.memory_space<vmem>>, vector<1x64x64xf32>
    %37 = vector.shape_cast %36 : vector<1x64x64xf32> to vector<64x64xf32>
    %cst_39 = arith.constant dense<0.000000e+00> : vector<16x64xf32>
    %38 = tpu.matmul %35, %37, %cst_39 {dimension_numbers = #tpu.dot_dimension_numbers<[1], [0], [0], [1], [0, 0, 1, 1], [], []>} : vector<16x64xf32>, vector<64x64xf32>, vector<16x64xf32> -> vector<16x64xf32>
    %c31_40 = arith.constant 31 : index
    %c0_41 = arith.constant 0 : index
    %39 = vector.load %arg12[%c31_40, %c0_41] : memref<48x64xf32, #tpu.memory_space<vmem>>, vector<16x64xf32>
    %c4 = arith.constant 4 : index
    %c0_42 = arith.constant 0 : index
    %c0_43 = arith.constant 0 : index
    %40 = vector.load %arg2[%c4, %c0_42, %c0_43] : memref<33x64x64xf32, #tpu.memory_space<vmem>>, vector<1x64x64xf32>
    %41 = vector.shape_cast %40 : vector<1x64x64xf32> to vector<64x64xf32>
    %cst_44 = arith.constant dense<0.000000e+00> : vector<16x64xf32>
    %42 = tpu.matmul %39, %41, %cst_44 {dimension_numbers = #tpu.dot_dimension_numbers<[1], [0], [0], [1], [0, 0, 1, 1], [], []>} : vector<16x64xf32>, vector<64x64xf32>, vector<16x64xf32> -> vector<16x64xf32>
    %43 = arith.addf %38, %42 : vector<16x64xf32>
    %c32_45 = arith.constant 32 : index
    %c0_46 = arith.constant 0 : index
    %44 = vector.load %arg12[%c32_45, %c0_46] : memref<48x64xf32, #tpu.memory_space<vmem>>, vector<16x64xf32>
    %c5 = arith.constant 5 : index
    %c0_47 = arith.constant 0 : index
    %c0_48 = arith.constant 0 : index
    %45 = vector.load %arg2[%c5, %c0_47, %c0_48] : memref<33x64x64xf32, #tpu.memory_space<vmem>>, vector<1x64x64xf32>
    %46 = vector.shape_cast %45 : vector<1x64x64xf32> to vector<64x64xf32>
    %cst_49 = arith.constant dense<0.000000e+00> : vector<16x64xf32>
    %47 = tpu.matmul %44, %46, %cst_49 {dimension_numbers = #tpu.dot_dimension_numbers<[1], [0], [0], [1], [0, 0, 1, 1], [], []>} : vector<16x64xf32>, vector<64x64xf32>, vector<16x64xf32> -> vector<16x64xf32>
    %48 = arith.addf %43, %47 : vector<16x64xf32>
    %c1_50 = arith.constant 1 : index
    %c0_51 = arith.constant 0 : index
    %49 = vector.load %arg3[%c1_50, %c0_51] : memref<11x64xf32, #tpu.memory_space<vmem>>, vector<1x64xf32>
    %50 = vector.broadcast %49 : vector<1x64xf32> to vector<16x64xf32>
    %51 = arith.mulf %48, %50 : vector<16x64xf32>
    %c1_52 = arith.constant 1 : index
    %c0_53 = arith.constant 0 : index
    %52 = vector.load %arg4[%c1_52, %c0_53] : memref<11x64xf32, #tpu.memory_space<vmem>>, vector<1x64xf32>
    %53 = vector.broadcast %52 : vector<1x64xf32> to vector<16x64xf32>
    %54 = arith.addf %51, %53 : vector<16x64xf32>
    %cst_54 = arith.constant 0.000000e+00 : f32
    %55 = vector.broadcast %cst_54 : f32 to vector<16x64xf32>
    %56 = arith.maximumf %54, %55 : vector<16x64xf32>
    %57 = arith.addf %56, %44 : vector<16x64xf32>
    %c32_55 = arith.constant 32 : index
    %c0_56 = arith.constant 0 : index
    %58 = vector.load %arg12[%c32_55, %c0_56] : memref<48x64xf32, #tpu.memory_space<vmem>>, vector<16x64xf32>
    tpu.vector_store %arg12[%c32_55, %c0_56], %57 {strides = array<i32>} : memref<48x64xf32, #tpu.memory_space<vmem>>, vector<16x64xf32>,
    %c26 = arith.constant 26 : index
    %c0_57 = arith.constant 0 : index
    %59 = vector.load %arg12[%c26, %c0_57] : memref<48x64xf32, #tpu.memory_space<vmem>>, vector<16x64xf32>
    %c6 = arith.constant 6 : index
    %c0_58 = arith.constant 0 : index
    %c0_59 = arith.constant 0 : index
    %60 = vector.load %arg2[%c6, %c0_58, %c0_59] : memref<33x64x64xf32, #tpu.memory_space<vmem>>, vector<1x64x64xf32>
    %61 = vector.shape_cast %60 : vector<1x64x64xf32> to vector<64x64xf32>
    %cst_60 = arith.constant dense<0.000000e+00> : vector<16x64xf32>
    %62 = tpu.matmul %59, %61, %cst_60 {dimension_numbers = #tpu.dot_dimension_numbers<[1], [0], [0], [1], [0, 0, 1, 1], [], []>} : vector<16x64xf32>, vector<64x64xf32>, vector<16x64xf32> -> vector<16x64xf32>
    %c29 = arith.constant 29 : index
    %c0_61 = arith.constant 0 : index
    %63 = vector.load %arg12[%c29, %c0_61] : memref<48x64xf32, #tpu.memory_space<vmem>>, vector<16x64xf32>
    %c7 = arith.constant 7 : index
    %c0_62 = arith.constant 0 : index
    %c0_63 = arith.constant 0 : index
    %64 = vector.load %arg2[%c7, %c0_62, %c0_63] : memref<33x64x64xf32, #tpu.memory_space<vmem>>, vector<1x64x64xf32>
    %65 = vector.shape_cast %64 : vector<1x64x64xf32> to vector<64x64xf32>
    %cst_64 = arith.constant dense<0.000000e+00> : vector<16x64xf32>
    %66 = tpu.matmul %63, %65, %cst_64 {dimension_numbers = #tpu.dot_dimension_numbers<[1], [0], [0], [1], [0, 0, 1, 1], [], []>} : vector<16x64xf32>, vector<64x64xf32>, vector<16x64xf32> -> vector<16x64xf32>
    %67 = arith.addf %62, %66 : vector<16x64xf32>
    %c32_65 = arith.constant 32 : index
    %c0_66 = arith.constant 0 : index
    %68 = vector.load %arg12[%c32_65, %c0_66] : memref<48x64xf32, #tpu.memory_space<vmem>>, vector<16x64xf32>
    %c8 = arith.constant 8 : index
    %c0_67 = arith.constant 0 : index
    %c0_68 = arith.constant 0 : index
    %69 = vector.load %arg2[%c8, %c0_67, %c0_68] : memref<33x64x64xf32, #tpu.memory_space<vmem>>, vector<1x64x64xf32>
    %70 = vector.shape_cast %69 : vector<1x64x64xf32> to vector<64x64xf32>
    %cst_69 = arith.constant dense<0.000000e+00> : vector<16x64xf32>
    %71 = tpu.matmul %68, %70, %cst_69 {dimension_numbers = #tpu.dot_dimension_numbers<[1], [0], [0], [1], [0, 0, 1, 1], [], []>} : vector<16x64xf32>, vector<64x64xf32>, vector<16x64xf32> -> vector<16x64xf32>
    %72 = arith.addf %67, %71 : vector<16x64xf32>
    %c2_70 = arith.constant 2 : index
    %c0_71 = arith.constant 0 : index
    %73 = vector.load %arg3[%c2_70, %c0_71] : memref<11x64xf32, #tpu.memory_space<vmem>>, vector<1x64xf32>
    %74 = vector.broadcast %73 : vector<1x64xf32> to vector<16x64xf32>
    %75 = arith.mulf %72, %74 : vector<16x64xf32>
    %c2_72 = arith.constant 2 : index
    %c0_73 = arith.constant 0 : index
    %76 = vector.load %arg4[%c2_72, %c0_73] : memref<11x64xf32, #tpu.memory_space<vmem>>, vector<1x64xf32>
    %77 = vector.broadcast %76 : vector<1x64xf32> to vector<16x64xf32>
    %78 = arith.addf %75, %77 : vector<16x64xf32>
    %cst_74 = arith.constant 0.000000e+00 : f32
    %79 = vector.broadcast %cst_74 : f32 to vector<16x64xf32>
    %80 = arith.maximumf %78, %79 : vector<16x64xf32>
    %81 = arith.addf %80, %68 : vector<16x64xf32>
    %c32_75 = arith.constant 32 : index
    %c0_76 = arith.constant 0 : index
    %82 = vector.load %arg12[%c32_75, %c0_76] : memref<48x64xf32, #tpu.memory_space<vmem>>, vector<16x64xf32>
    tpu.vector_store %arg12[%c32_75, %c0_76], %81 {strides = array<i32>} : memref<48x64xf32, #tpu.memory_space<vmem>>, vector<16x64xf32>,
    %c14 = arith.constant 14 : index
    %c0_77 = arith.constant 0 : index
    %83 = vector.load %arg12[%c14, %c0_77] : memref<48x64xf32, #tpu.memory_space<vmem>>, vector<16x64xf32>
    %c9 = arith.constant 9 : index
    %c0_78 = arith.constant 0 : index
    %c0_79 = arith.constant 0 : index
    %84 = vector.load %arg2[%c9, %c0_78, %c0_79] : memref<33x64x64xf32, #tpu.memory_space<vmem>>, vector<1x64x64xf32>
    %85 = vector.shape_cast %84 : vector<1x64x64xf32> to vector<64x64xf32>
    %cst_80 = arith.constant dense<0.000000e+00> : vector<16x64xf32>
    %86 = tpu.matmul %83, %85, %cst_80 {dimension_numbers = #tpu.dot_dimension_numbers<[1], [0], [0], [1], [0, 0, 1, 1], [], []>} : vector<16x64xf32>, vector<64x64xf32>, vector<16x64xf32> -> vector<16x64xf32>
    %c23 = arith.constant 23 : index
    %c0_81 = arith.constant 0 : index
    %87 = vector.load %arg12[%c23, %c0_81] : memref<48x64xf32, #tpu.memory_space<vmem>>, vector<16x64xf32>
    %c10 = arith.constant 10 : index
    %c0_82 = arith.constant 0 : index
    %c0_83 = arith.constant 0 : index
    %88 = vector.load %arg2[%c10, %c0_82, %c0_83] : memref<33x64x64xf32, #tpu.memory_space<vmem>>, vector<1x64x64xf32>
    %89 = vector.shape_cast %88 : vector<1x64x64xf32> to vector<64x64xf32>
    %cst_84 = arith.constant dense<0.000000e+00> : vector<16x64xf32>
    %90 = tpu.matmul %87, %89, %cst_84 {dimension_numbers = #tpu.dot_dimension_numbers<[1], [0], [0], [1], [0, 0, 1, 1], [], []>} : vector<16x64xf32>, vector<64x64xf32>, vector<16x64xf32> -> vector<16x64xf32>
    %91 = arith.addf %86, %90 : vector<16x64xf32>
    %c32_85 = arith.constant 32 : index
    %c0_86 = arith.constant 0 : index
    %92 = vector.load %arg12[%c32_85, %c0_86] : memref<48x64xf32, #tpu.memory_space<vmem>>, vector<16x64xf32>
    %c11 = arith.constant 11 : index
    %c0_87 = arith.constant 0 : index
    %c0_88 = arith.constant 0 : index
    %93 = vector.load %arg2[%c11, %c0_87, %c0_88] : memref<33x64x64xf32, #tpu.memory_space<vmem>>, vector<1x64x64xf32>
    %94 = vector.shape_cast %93 : vector<1x64x64xf32> to vector<64x64xf32>
    %cst_89 = arith.constant dense<0.000000e+00> : vector<16x64xf32>
    %95 = tpu.matmul %92, %94, %cst_89 {dimension_numbers = #tpu.dot_dimension_numbers<[1], [0], [0], [1], [0, 0, 1, 1], [], []>} : vector<16x64xf32>, vector<64x64xf32>, vector<16x64xf32> -> vector<16x64xf32>
    %96 = arith.addf %91, %95 : vector<16x64xf32>
    %c3_90 = arith.constant 3 : index
    %c0_91 = arith.constant 0 : index
    %97 = vector.load %arg3[%c3_90, %c0_91] : memref<11x64xf32, #tpu.memory_space<vmem>>, vector<1x64xf32>
    %98 = vector.broadcast %97 : vector<1x64xf32> to vector<16x64xf32>
    %99 = arith.mulf %96, %98 : vector<16x64xf32>
    %c3_92 = arith.constant 3 : index
    %c0_93 = arith.constant 0 : index
    %100 = vector.load %arg4[%c3_92, %c0_93] : memref<11x64xf32, #tpu.memory_space<vmem>>, vector<1x64xf32>
    %101 = vector.broadcast %100 : vector<1x64xf32> to vector<16x64xf32>
    %102 = arith.addf %99, %101 : vector<16x64xf32>
    %cst_94 = arith.constant 0.000000e+00 : f32
    %103 = vector.broadcast %cst_94 : f32 to vector<16x64xf32>
    %104 = arith.maximumf %102, %103 : vector<16x64xf32>
    %105 = arith.addf %104, %92 : vector<16x64xf32>
    %c32_95 = arith.constant 32 : index
    %c0_96 = arith.constant 0 : index
    %106 = vector.load %arg12[%c32_95, %c0_96] : memref<48x64xf32, #tpu.memory_space<vmem>>, vector<16x64xf32>
    tpu.vector_store %arg12[%c32_95, %c0_96], %105 {strides = array<i32>} : memref<48x64xf32, #tpu.memory_space<vmem>>, vector<16x64xf32>,
    %c30_97 = arith.constant 30 : index
    %c0_98 = arith.constant 0 : index
    %107 = vector.load %arg12[%c30_97, %c0_98] : memref<48x64xf32, #tpu.memory_space<vmem>>, vector<16x64xf32>
    %c12 = arith.constant 12 : index
    %c0_99 = arith.constant 0 : index
    %c0_100 = arith.constant 0 : index
    %108 = vector.load %arg2[%c12, %c0_99, %c0_100] : memref<33x64x64xf32, #tpu.memory_space<vmem>>, vector<1x64x64xf32>
    %109 = vector.shape_cast %108 : vector<1x64x64xf32> to vector<64x64xf32>
    %cst_101 = arith.constant dense<0.000000e+00> : vector<16x64xf32>
    %110 = tpu.matmul %107, %109, %cst_101 {dimension_numbers = #tpu.dot_dimension_numbers<[1], [0], [0], [1], [0, 0, 1, 1], [], []>} : vector<16x64xf32>, vector<64x64xf32>, vector<16x64xf32> -> vector<16x64xf32>
    %c31_102 = arith.constant 31 : index
    %c0_103 = arith.constant 0 : index
    %111 = vector.load %arg12[%c31_102, %c0_103] : memref<48x64xf32, #tpu.memory_space<vmem>>, vector<16x64xf32>
    %c13 = arith.constant 13 : index
    %c0_104 = arith.constant 0 : index
    %c0_105 = arith.constant 0 : index
    %112 = vector.load %arg2[%c13, %c0_104, %c0_105] : memref<33x64x64xf32, #tpu.memory_space<vmem>>, vector<1x64x64xf32>
    %113 = vector.shape_cast %112 : vector<1x64x64xf32> to vector<64x64xf32>
    %cst_106 = arith.constant dense<0.000000e+00> : vector<16x64xf32>
    %114 = tpu.matmul %111, %113, %cst_106 {dimension_numbers = #tpu.dot_dimension_numbers<[1], [0], [0], [1], [0, 0, 1, 1], [], []>} : vector<16x64xf32>, vector<64x64xf32>, vector<16x64xf32> -> vector<16x64xf32>
    %115 = arith.addf %110, %114 : vector<16x64xf32>
    %c32_107 = arith.constant 32 : index
    %c0_108 = arith.constant 0 : index
    %116 = vector.load %arg12[%c32_107, %c0_108] : memref<48x64xf32, #tpu.memory_space<vmem>>, vector<16x64xf32>
    %c14_109 = arith.constant 14 : index
    %c0_110 = arith.constant 0 : index
    %c0_111 = arith.constant 0 : index
    %117 = vector.load %arg2[%c14_109, %c0_110, %c0_111] : memref<33x64x64xf32, #tpu.memory_space<vmem>>, vector<1x64x64xf32>
    %118 = vector.shape_cast %117 : vector<1x64x64xf32> to vector<64x64xf32>
    %cst_112 = arith.constant dense<0.000000e+00> : vector<16x64xf32>
    %119 = tpu.matmul %116, %118, %cst_112 {dimension_numbers = #tpu.dot_dimension_numbers<[1], [0], [0], [1], [0, 0, 1, 1], [], []>} : vector<16x64xf32>, vector<64x64xf32>, vector<16x64xf32> -> vector<16x64xf32>
    %120 = arith.addf %115, %119 : vector<16x64xf32>
    %c4_113 = arith.constant 4 : index
    %c0_114 = arith.constant 0 : index
    %121 = vector.load %arg3[%c4_113, %c0_114] : memref<11x64xf32, #tpu.memory_space<vmem>>, vector<1x64xf32>
    %122 = vector.broadcast %121 : vector<1x64xf32> to vector<16x64xf32>
    %123 = arith.mulf %120, %122 : vector<16x64xf32>
    %c4_115 = arith.constant 4 : index
    %c0_116 = arith.constant 0 : index
    %124 = vector.load %arg4[%c4_115, %c0_116] : memref<11x64xf32, #tpu.memory_space<vmem>>, vector<1x64xf32>
    %125 = vector.broadcast %124 : vector<1x64xf32> to vector<16x64xf32>
    %126 = arith.addf %123, %125 : vector<16x64xf32>
    %cst_117 = arith.constant 0.000000e+00 : f32
    %127 = vector.broadcast %cst_117 : f32 to vector<16x64xf32>
    %128 = arith.maximumf %126, %127 : vector<16x64xf32>
    %129 = arith.addf %128, %116 : vector<16x64xf32>
    %c32_118 = arith.constant 32 : index
    %c0_119 = arith.constant 0 : index
    %130 = vector.load %arg12[%c32_118, %c0_119] : memref<48x64xf32, #tpu.memory_space<vmem>>, vector<16x64xf32>
    tpu.vector_store %arg12[%c32_118, %c0_119], %129 {strides = array<i32>} : memref<48x64xf32, #tpu.memory_space<vmem>>, vector<16x64xf32>,
    %c26_120 = arith.constant 26 : index
    %c0_121 = arith.constant 0 : index
    %131 = vector.load %arg12[%c26_120, %c0_121] : memref<48x64xf32, #tpu.memory_space<vmem>>, vector<16x64xf32>
    %c15 = arith.constant 15 : index
    %c0_122 = arith.constant 0 : index
    %c0_123 = arith.constant 0 : index
    %132 = vector.load %arg2[%c15, %c0_122, %c0_123] : memref<33x64x64xf32, #tpu.memory_space<vmem>>, vector<1x64x64xf32>
    %133 = vector.shape_cast %132 : vector<1x64x64xf32> to vector<64x64xf32>
    %cst_124 = arith.constant dense<0.000000e+00> : vector<16x64xf32>
    %134 = tpu.matmul %131, %133, %cst_124 {dimension_numbers = #tpu.dot_dimension_numbers<[1], [0], [0], [1], [0, 0, 1, 1], [], []>} : vector<16x64xf32>, vector<64x64xf32>, vector<16x64xf32> -> vector<16x64xf32>
    %c29_125 = arith.constant 29 : index
    %c0_126 = arith.constant 0 : index
    %135 = vector.load %arg12[%c29_125, %c0_126] : memref<48x64xf32, #tpu.memory_space<vmem>>, vector<16x64xf32>
    %c16 = arith.constant 16 : index
    %c0_127 = arith.constant 0 : index
    %c0_128 = arith.constant 0 : index
    %136 = vector.load %arg2[%c16, %c0_127, %c0_128] : memref<33x64x64xf32, #tpu.memory_space<vmem>>, vector<1x64x64xf32>
    %137 = vector.shape_cast %136 : vector<1x64x64xf32> to vector<64x64xf32>
    %cst_129 = arith.constant dense<0.000000e+00> : vector<16x64xf32>
    %138 = tpu.matmul %135, %137, %cst_129 {dimension_numbers = #tpu.dot_dimension_numbers<[1], [0], [0], [1], [0, 0, 1, 1], [], []>} : vector<16x64xf32>, vector<64x64xf32>, vector<16x64xf32> -> vector<16x64xf32>
    %139 = arith.addf %134, %138 : vector<16x64xf32>
    %c32_130 = arith.constant 32 : index
    %c0_131 = arith.constant 0 : index
    %140 = vector.load %arg12[%c32_130, %c0_131] : memref<48x64xf32, #tpu.memory_space<vmem>>, vector<16x64xf32>
    %c17 = arith.constant 17 : index
    %c0_132 = arith.constant 0 : index
    %c0_133 = arith.constant 0 : index
    %141 = vector.load %arg2[%c17, %c0_132, %c0_133] : memref<33x64x64xf32, #tpu.memory_space<vmem>>, vector<1x64x64xf32>
    %142 = vector.shape_cast %141 : vector<1x64x64xf32> to vector<64x64xf32>
    %cst_134 = arith.constant dense<0.000000e+00> : vector<16x64xf32>
    %143 = tpu.matmul %140, %142, %cst_134 {dimension_numbers = #tpu.dot_dimension_numbers<[1], [0], [0], [1], [0, 0, 1, 1], [], []>} : vector<16x64xf32>, vector<64x64xf32>, vector<16x64xf32> -> vector<16x64xf32>
    %144 = arith.addf %139, %143 : vector<16x64xf32>
    %c5_135 = arith.constant 5 : index
    %c0_136 = arith.constant 0 : index
    %145 = vector.load %arg3[%c5_135, %c0_136] : memref<11x64xf32, #tpu.memory_space<vmem>>, vector<1x64xf32>
    %146 = vector.broadcast %145 : vector<1x64xf32> to vector<16x64xf32>
    %147 = arith.mulf %144, %146 : vector<16x64xf32>
    %c5_137 = arith.constant 5 : index
    %c0_138 = arith.constant 0 : index
    %148 = vector.load %arg4[%c5_137, %c0_138] : memref<11x64xf32, #tpu.memory_space<vmem>>, vector<1x64xf32>
    %149 = vector.broadcast %148 : vector<1x64xf32> to vector<16x64xf32>
    %150 = arith.addf %147, %149 : vector<16x64xf32>
    %cst_139 = arith.constant 0.000000e+00 : f32
    %151 = vector.broadcast %cst_139 : f32 to vector<16x64xf32>
    %152 = arith.maximumf %150, %151 : vector<16x64xf32>
    %153 = arith.addf %152, %140 : vector<16x64xf32>
    %c32_140 = arith.constant 32 : index
    %c0_141 = arith.constant 0 : index
    %154 = vector.load %arg12[%c32_140, %c0_141] : memref<48x64xf32, #tpu.memory_space<vmem>>, vector<16x64xf32>
    tpu.vector_store %arg12[%c32_140, %c0_141], %153 {strides = array<i32>} : memref<48x64xf32, #tpu.memory_space<vmem>>, vector<16x64xf32>,
    %c14_142 = arith.constant 14 : index
    %c0_143 = arith.constant 0 : index
    %155 = vector.load %arg12[%c14_142, %c0_143] : memref<48x64xf32, #tpu.memory_space<vmem>>, vector<16x64xf32>
    %c18 = arith.constant 18 : index
    %c0_144 = arith.constant 0 : index
    %c0_145 = arith.constant 0 : index
    %156 = vector.load %arg2[%c18, %c0_144, %c0_145] : memref<33x64x64xf32, #tpu.memory_space<vmem>>, vector<1x64x64xf32>
    %157 = vector.shape_cast %156 : vector<1x64x64xf32> to vector<64x64xf32>
    %cst_146 = arith.constant dense<0.000000e+00> : vector<16x64xf32>
    %158 = tpu.matmul %155, %157, %cst_146 {dimension_numbers = #tpu.dot_dimension_numbers<[1], [0], [0], [1], [0, 0, 1, 1], [], []>} : vector<16x64xf32>, vector<64x64xf32>, vector<16x64xf32> -> vector<16x64xf32>
    %c23_147 = arith.constant 23 : index
    %c0_148 = arith.constant 0 : index
    %159 = vector.load %arg12[%c23_147, %c0_148] : memref<48x64xf32, #tpu.memory_space<vmem>>, vector<16x64xf32>
    %c19 = arith.constant 19 : index
    %c0_149 = arith.constant 0 : index
    %c0_150 = arith.constant 0 : index
    %160 = vector.load %arg2[%c19, %c0_149, %c0_150] : memref<33x64x64xf32, #tpu.memory_space<vmem>>, vector<1x64x64xf32>
    %161 = vector.shape_cast %160 : vector<1x64x64xf32> to vector<64x64xf32>
    %cst_151 = arith.constant dense<0.000000e+00> : vector<16x64xf32>
    %162 = tpu.matmul %159, %161, %cst_151 {dimension_numbers = #tpu.dot_dimension_numbers<[1], [0], [0], [1], [0, 0, 1, 1], [], []>} : vector<16x64xf32>, vector<64x64xf32>, vector<16x64xf32> -> vector<16x64xf32>
    %163 = arith.addf %158, %162 : vector<16x64xf32>
    %c32_152 = arith.constant 32 : index
    %c0_153 = arith.constant 0 : index
    %164 = vector.load %arg12[%c32_152, %c0_153] : memref<48x64xf32, #tpu.memory_space<vmem>>, vector<16x64xf32>
    %c20 = arith.constant 20 : index
    %c0_154 = arith.constant 0 : index
    %c0_155 = arith.constant 0 : index
    %165 = vector.load %arg2[%c20, %c0_154, %c0_155] : memref<33x64x64xf32, #tpu.memory_space<vmem>>, vector<1x64x64xf32>
    %166 = vector.shape_cast %165 : vector<1x64x64xf32> to vector<64x64xf32>
    %cst_156 = arith.constant dense<0.000000e+00> : vector<16x64xf32>
    %167 = tpu.matmul %164, %166, %cst_156 {dimension_numbers = #tpu.dot_dimension_numbers<[1], [0], [0], [1], [0, 0, 1, 1], [], []>} : vector<16x64xf32>, vector<64x64xf32>, vector<16x64xf32> -> vector<16x64xf32>
    %168 = arith.addf %163, %167 : vector<16x64xf32>
    %c6_157 = arith.constant 6 : index
    %c0_158 = arith.constant 0 : index
    %169 = vector.load %arg3[%c6_157, %c0_158] : memref<11x64xf32, #tpu.memory_space<vmem>>, vector<1x64xf32>
    %170 = vector.broadcast %169 : vector<1x64xf32> to vector<16x64xf32>
    %171 = arith.mulf %168, %170 : vector<16x64xf32>
    %c6_159 = arith.constant 6 : index
    %c0_160 = arith.constant 0 : index
    %172 = vector.load %arg4[%c6_159, %c0_160] : memref<11x64xf32, #tpu.memory_space<vmem>>, vector<1x64xf32>
    %173 = vector.broadcast %172 : vector<1x64xf32> to vector<16x64xf32>
    %174 = arith.addf %171, %173 : vector<16x64xf32>
    %cst_161 = arith.constant 0.000000e+00 : f32
    %175 = vector.broadcast %cst_161 : f32 to vector<16x64xf32>
    %176 = arith.maximumf %174, %175 : vector<16x64xf32>
    %177 = arith.addf %176, %164 : vector<16x64xf32>
    %c32_162 = arith.constant 32 : index
    %c0_163 = arith.constant 0 : index
    %178 = vector.load %arg12[%c32_162, %c0_163] : memref<48x64xf32, #tpu.memory_space<vmem>>, vector<16x64xf32>
    tpu.vector_store %arg12[%c32_162, %c0_163], %177 {strides = array<i32>} : memref<48x64xf32, #tpu.memory_space<vmem>>, vector<16x64xf32>,
    %c30_164 = arith.constant 30 : index
    %c0_165 = arith.constant 0 : index
    %179 = vector.load %arg12[%c30_164, %c0_165] : memref<48x64xf32, #tpu.memory_space<vmem>>, vector<16x64xf32>
    %c21 = arith.constant 21 : index
    %c0_166 = arith.constant 0 : index
    %c0_167 = arith.constant 0 : index
    %180 = vector.load %arg2[%c21, %c0_166, %c0_167] : memref<33x64x64xf32, #tpu.memory_space<vmem>>, vector<1x64x64xf32>
    %181 = vector.shape_cast %180 : vector<1x64x64xf32> to vector<64x64xf32>
    %cst_168 = arith.constant dense<0.000000e+00> : vector<16x64xf32>
    %182 = tpu.matmul %179, %181, %cst_168 {dimension_numbers = #tpu.dot_dimension_numbers<[1], [0], [0], [1], [0, 0, 1, 1], [], []>} : vector<16x64xf32>, vector<64x64xf32>, vector<16x64xf32> -> vector<16x64xf32>
    %c31_169 = arith.constant 31 : index
    %c0_170 = arith.constant 0 : index
    %183 = vector.load %arg12[%c31_169, %c0_170] : memref<48x64xf32, #tpu.memory_space<vmem>>, vector<16x64xf32>
    %c22 = arith.constant 22 : index
    %c0_171 = arith.constant 0 : index
    %c0_172 = arith.constant 0 : index
    %184 = vector.load %arg2[%c22, %c0_171, %c0_172] : memref<33x64x64xf32, #tpu.memory_space<vmem>>, vector<1x64x64xf32>
    %185 = vector.shape_cast %184 : vector<1x64x64xf32> to vector<64x64xf32>
    %cst_173 = arith.constant dense<0.000000e+00> : vector<16x64xf32>
    %186 = tpu.matmul %183, %185, %cst_173 {dimension_numbers = #tpu.dot_dimension_numbers<[1], [0], [0], [1], [0, 0, 1, 1], [], []>} : vector<16x64xf32>, vector<64x64xf32>, vector<16x64xf32> -> vector<16x64xf32>
    %187 = arith.addf %182, %186 : vector<16x64xf32>
    %c32_174 = arith.constant 32 : index
    %c0_175 = arith.constant 0 : index
    %188 = vector.load %arg12[%c32_174, %c0_175] : memref<48x64xf32, #tpu.memory_space<vmem>>, vector<16x64xf32>
    %c23_176 = arith.constant 23 : index
    %c0_177 = arith.constant 0 : index
    %c0_178 = arith.constant 0 : index
    %189 = vector.load %arg2[%c23_176, %c0_177, %c0_178] : memref<33x64x64xf32, #tpu.memory_space<vmem>>, vector<1x64x64xf32>
    %190 = vector.shape_cast %189 : vector<1x64x64xf32> to vector<64x64xf32>
    %cst_179 = arith.constant dense<0.000000e+00> : vector<16x64xf32>
    %191 = tpu.matmul %188, %190, %cst_179 {dimension_numbers = #tpu.dot_dimension_numbers<[1], [0], [0], [1], [0, 0, 1, 1], [], []>} : vector<16x64xf32>, vector<64x64xf32>, vector<16x64xf32> -> vector<16x64xf32>
    %192 = arith.addf %187, %191 : vector<16x64xf32>
    %c7_180 = arith.constant 7 : index
    %c0_181 = arith.constant 0 : index
    %193 = vector.load %arg3[%c7_180, %c0_181] : memref<11x64xf32, #tpu.memory_space<vmem>>, vector<1x64xf32>
    %194 = vector.broadcast %193 : vector<1x64xf32> to vector<16x64xf32>
    %195 = arith.mulf %192, %194 : vector<16x64xf32>
    %c7_182 = arith.constant 7 : index
    %c0_183 = arith.constant 0 : index
    %196 = vector.load %arg4[%c7_182, %c0_183] : memref<11x64xf32, #tpu.memory_space<vmem>>, vector<1x64xf32>
    %197 = vector.broadcast %196 : vector<1x64xf32> to vector<16x64xf32>
    %198 = arith.addf %195, %197 : vector<16x64xf32>
    %cst_184 = arith.constant 0.000000e+00 : f32
    %199 = vector.broadcast %cst_184 : f32 to vector<16x64xf32>
    %200 = arith.maximumf %198, %199 : vector<16x64xf32>
    %201 = arith.addf %200, %188 : vector<16x64xf32>
    %c32_185 = arith.constant 32 : index
    %c0_186 = arith.constant 0 : index
    %202 = vector.load %arg12[%c32_185, %c0_186] : memref<48x64xf32, #tpu.memory_space<vmem>>, vector<16x64xf32>
    tpu.vector_store %arg12[%c32_185, %c0_186], %201 {strides = array<i32>} : memref<48x64xf32, #tpu.memory_space<vmem>>, vector<16x64xf32>,
    %c26_187 = arith.constant 26 : index
    %c0_188 = arith.constant 0 : index
    %203 = vector.load %arg12[%c26_187, %c0_188] : memref<48x64xf32, #tpu.memory_space<vmem>>, vector<16x64xf32>
    %c24_189 = arith.constant 24 : index
    %c0_190 = arith.constant 0 : index
    %c0_191 = arith.constant 0 : index
    %204 = vector.load %arg2[%c24_189, %c0_190, %c0_191] : memref<33x64x64xf32, #tpu.memory_space<vmem>>, vector<1x64x64xf32>
    %205 = vector.shape_cast %204 : vector<1x64x64xf32> to vector<64x64xf32>
    %cst_192 = arith.constant dense<0.000000e+00> : vector<16x64xf32>
    %206 = tpu.matmul %203, %205, %cst_192 {dimension_numbers = #tpu.dot_dimension_numbers<[1], [0], [0], [1], [0, 0, 1, 1], [], []>} : vector<16x64xf32>, vector<64x64xf32>, vector<16x64xf32> -> vector<16x64xf32>
    %c29_193 = arith.constant 29 : index
    %c0_194 = arith.constant 0 : index
    %207 = vector.load %arg12[%c29_193, %c0_194] : memref<48x64xf32, #tpu.memory_space<vmem>>, vector<16x64xf32>
    %c25 = arith.constant 25 : index
    %c0_195 = arith.constant 0 : index
    %c0_196 = arith.constant 0 : index
    %208 = vector.load %arg2[%c25, %c0_195, %c0_196] : memref<33x64x64xf32, #tpu.memory_space<vmem>>, vector<1x64x64xf32>
    %209 = vector.shape_cast %208 : vector<1x64x64xf32> to vector<64x64xf32>
    %cst_197 = arith.constant dense<0.000000e+00> : vector<16x64xf32>
    %210 = tpu.matmul %207, %209, %cst_197 {dimension_numbers = #tpu.dot_dimension_numbers<[1], [0], [0], [1], [0, 0, 1, 1], [], []>} : vector<16x64xf32>, vector<64x64xf32>, vector<16x64xf32> -> vector<16x64xf32>
    %211 = arith.addf %206, %210 : vector<16x64xf32>
    %c32_198 = arith.constant 32 : index
    %c0_199 = arith.constant 0 : index
    %212 = vector.load %arg12[%c32_198, %c0_199] : memref<48x64xf32, #tpu.memory_space<vmem>>, vector<16x64xf32>
    %c26_200 = arith.constant 26 : index
    %c0_201 = arith.constant 0 : index
    %c0_202 = arith.constant 0 : index
    %213 = vector.load %arg2[%c26_200, %c0_201, %c0_202] : memref<33x64x64xf32, #tpu.memory_space<vmem>>, vector<1x64x64xf32>
    %214 = vector.shape_cast %213 : vector<1x64x64xf32> to vector<64x64xf32>
    %cst_203 = arith.constant dense<0.000000e+00> : vector<16x64xf32>
    %215 = tpu.matmul %212, %214, %cst_203 {dimension_numbers = #tpu.dot_dimension_numbers<[1], [0], [0], [1], [0, 0, 1, 1], [], []>} : vector<16x64xf32>, vector<64x64xf32>, vector<16x64xf32> -> vector<16x64xf32>
    %216 = arith.addf %211, %215 : vector<16x64xf32>
    %c8_204 = arith.constant 8 : index
    %c0_205 = arith.constant 0 : index
    %217 = vector.load %arg3[%c8_204, %c0_205] : memref<11x64xf32, #tpu.memory_space<vmem>>, vector<1x64xf32>
    %218 = vector.broadcast %217 : vector<1x64xf32> to vector<16x64xf32>
    %219 = arith.mulf %216, %218 : vector<16x64xf32>
    %c8_206 = arith.constant 8 : index
    %c0_207 = arith.constant 0 : index
    %220 = vector.load %arg4[%c8_206, %c0_207] : memref<11x64xf32, #tpu.memory_space<vmem>>, vector<1x64xf32>
    %221 = vector.broadcast %220 : vector<1x64xf32> to vector<16x64xf32>
    %222 = arith.addf %219, %221 : vector<16x64xf32>
    %cst_208 = arith.constant 0.000000e+00 : f32
    %223 = vector.broadcast %cst_208 : f32 to vector<16x64xf32>
    %224 = arith.maximumf %222, %223 : vector<16x64xf32>
    %225 = arith.addf %224, %212 : vector<16x64xf32>
    %c32_209 = arith.constant 32 : index
    %c0_210 = arith.constant 0 : index
    %226 = vector.load %arg12[%c32_209, %c0_210] : memref<48x64xf32, #tpu.memory_space<vmem>>, vector<16x64xf32>
    tpu.vector_store %arg12[%c32_209, %c0_210], %225 {strides = array<i32>} : memref<48x64xf32, #tpu.memory_space<vmem>>, vector<16x64xf32>,
    %c14_211 = arith.constant 14 : index
    %c0_212 = arith.constant 0 : index
    %227 = vector.load %arg12[%c14_211, %c0_212] : memref<48x64xf32, #tpu.memory_space<vmem>>, vector<16x64xf32>
    %c27 = arith.constant 27 : index
    %c0_213 = arith.constant 0 : index
    %c0_214 = arith.constant 0 : index
    %228 = vector.load %arg2[%c27, %c0_213, %c0_214] : memref<33x64x64xf32, #tpu.memory_space<vmem>>, vector<1x64x64xf32>
    %229 = vector.shape_cast %228 : vector<1x64x64xf32> to vector<64x64xf32>
    %cst_215 = arith.constant dense<0.000000e+00> : vector<16x64xf32>
    %230 = tpu.matmul %227, %229, %cst_215 {dimension_numbers = #tpu.dot_dimension_numbers<[1], [0], [0], [1], [0, 0, 1, 1], [], []>} : vector<16x64xf32>, vector<64x64xf32>, vector<16x64xf32> -> vector<16x64xf32>
    %c23_216 = arith.constant 23 : index
    %c0_217 = arith.constant 0 : index
    %231 = vector.load %arg12[%c23_216, %c0_217] : memref<48x64xf32, #tpu.memory_space<vmem>>, vector<16x64xf32>
    %c28 = arith.constant 28 : index
    %c0_218 = arith.constant 0 : index
    %c0_219 = arith.constant 0 : index
    %232 = vector.load %arg2[%c28, %c0_218, %c0_219] : memref<33x64x64xf32, #tpu.memory_space<vmem>>, vector<1x64x64xf32>
    %233 = vector.shape_cast %232 : vector<1x64x64xf32> to vector<64x64xf32>
    %cst_220 = arith.constant dense<0.000000e+00> : vector<16x64xf32>
    %234 = tpu.matmul %231, %233, %cst_220 {dimension_numbers = #tpu.dot_dimension_numbers<[1], [0], [0], [1], [0, 0, 1, 1], [], []>} : vector<16x64xf32>, vector<64x64xf32>, vector<16x64xf32> -> vector<16x64xf32>
    %235 = arith.addf %230, %234 : vector<16x64xf32>
    %c32_221 = arith.constant 32 : index
    %c0_222 = arith.constant 0 : index
    %236 = vector.load %arg12[%c32_221, %c0_222] : memref<48x64xf32, #tpu.memory_space<vmem>>, vector<16x64xf32>
    %c29_223 = arith.constant 29 : index
    %c0_224 = arith.constant 0 : index
    %c0_225 = arith.constant 0 : index
    %237 = vector.load %arg2[%c29_223, %c0_224, %c0_225] : memref<33x64x64xf32, #tpu.memory_space<vmem>>, vector<1x64x64xf32>
    %238 = vector.shape_cast %237 : vector<1x64x64xf32> to vector<64x64xf32>
    %cst_226 = arith.constant dense<0.000000e+00> : vector<16x64xf32>
    %239 = tpu.matmul %236, %238, %cst_226 {dimension_numbers = #tpu.dot_dimension_numbers<[1], [0], [0], [1], [0, 0, 1, 1], [], []>} : vector<16x64xf32>, vector<64x64xf32>, vector<16x64xf32> -> vector<16x64xf32>
    %240 = arith.addf %235, %239 : vector<16x64xf32>
    %c9_227 = arith.constant 9 : index
    %c0_228 = arith.constant 0 : index
    %241 = vector.load %arg3[%c9_227, %c0_228] : memref<11x64xf32, #tpu.memory_space<vmem>>, vector<1x64xf32>
    %242 = vector.broadcast %241 : vector<1x64xf32> to vector<16x64xf32>
    %243 = arith.mulf %240, %242 : vector<16x64xf32>
    %c9_229 = arith.constant 9 : index
    %c0_230 = arith.constant 0 : index
    %244 = vector.load %arg4[%c9_229, %c0_230] : memref<11x64xf32, #tpu.memory_space<vmem>>, vector<1x64xf32>
    %245 = vector.broadcast %244 : vector<1x64xf32> to vector<16x64xf32>
    %246 = arith.addf %243, %245 : vector<16x64xf32>
    %cst_231 = arith.constant 0.000000e+00 : f32
    %247 = vector.broadcast %cst_231 : f32 to vector<16x64xf32>
    %248 = arith.maximumf %246, %247 : vector<16x64xf32>
    %249 = arith.addf %248, %236 : vector<16x64xf32>
    %c32_232 = arith.constant 32 : index
    %c0_233 = arith.constant 0 : index
    %250 = vector.load %arg12[%c32_232, %c0_233] : memref<48x64xf32, #tpu.memory_space<vmem>>, vector<16x64xf32>
    tpu.vector_store %arg12[%c32_232, %c0_233], %249 {strides = array<i32>} : memref<48x64xf32, #tpu.memory_space<vmem>>, vector<16x64xf32>,
    %c30_234 = arith.constant 30 : index
    %c0_235 = arith.constant 0 : index
    %251 = vector.load %arg12[%c30_234, %c0_235] : memref<48x64xf32, #tpu.memory_space<vmem>>, vector<16x64xf32>
    %c30_236 = arith.constant 30 : index
    %c0_237 = arith.constant 0 : index
    %c0_238 = arith.constant 0 : index
    %252 = vector.load %arg2[%c30_236, %c0_237, %c0_238] : memref<33x64x64xf32, #tpu.memory_space<vmem>>, vector<1x64x64xf32>
    %253 = vector.shape_cast %252 : vector<1x64x64xf32> to vector<64x64xf32>
    %cst_239 = arith.constant dense<0.000000e+00> : vector<16x64xf32>
    %254 = tpu.matmul %251, %253, %cst_239 {dimension_numbers = #tpu.dot_dimension_numbers<[1], [0], [0], [1], [0, 0, 1, 1], [], []>} : vector<16x64xf32>, vector<64x64xf32>, vector<16x64xf32> -> vector<16x64xf32>
    %c31_240 = arith.constant 31 : index
    %c0_241 = arith.constant 0 : index
    %255 = vector.load %arg12[%c31_240, %c0_241] : memref<48x64xf32, #tpu.memory_space<vmem>>, vector<16x64xf32>
    %c31_242 = arith.constant 31 : index
    %c0_243 = arith.constant 0 : index
    %c0_244 = arith.constant 0 : index
    %256 = vector.load %arg2[%c31_242, %c0_243, %c0_244] : memref<33x64x64xf32, #tpu.memory_space<vmem>>, vector<1x64x64xf32>
    %257 = vector.shape_cast %256 : vector<1x64x64xf32> to vector<64x64xf32>
    %cst_245 = arith.constant dense<0.000000e+00> : vector<16x64xf32>
    %258 = tpu.matmul %255, %257, %cst_245 {dimension_numbers = #tpu.dot_dimension_numbers<[1], [0], [0], [1], [0, 0, 1, 1], [], []>} : vector<16x64xf32>, vector<64x64xf32>, vector<16x64xf32> -> vector<16x64xf32>
    %259 = arith.addf %254, %258 : vector<16x64xf32>
    %c32_246 = arith.constant 32 : index
    %c0_247 = arith.constant 0 : index
    %260 = vector.load %arg12[%c32_246, %c0_247] : memref<48x64xf32, #tpu.memory_space<vmem>>, vector<16x64xf32>
    %c32_248 = arith.constant 32 : index
    %c0_249 = arith.constant 0 : index
    %c0_250 = arith.constant 0 : index
    %261 = vector.load %arg2[%c32_248, %c0_249, %c0_250] : memref<33x64x64xf32, #tpu.memory_space<vmem>>, vector<1x64x64xf32>
    %262 = vector.shape_cast %261 : vector<1x64x64xf32> to vector<64x64xf32>
    %cst_251 = arith.constant dense<0.000000e+00> : vector<16x64xf32>
    %263 = tpu.matmul %260, %262, %cst_251 {dimension_numbers = #tpu.dot_dimension_numbers<[1], [0], [0], [1], [0, 0, 1, 1], [], []>} : vector<16x64xf32>, vector<64x64xf32>, vector<16x64xf32> -> vector<16x64xf32>
    %264 = arith.addf %259, %263 : vector<16x64xf32>
    %c10_252 = arith.constant 10 : index
    %c0_253 = arith.constant 0 : index
    %265 = vector.load %arg3[%c10_252, %c0_253] : memref<11x64xf32, #tpu.memory_space<vmem>>, vector<1x64xf32>
    %266 = vector.broadcast %265 : vector<1x64xf32> to vector<16x64xf32>
    %267 = arith.mulf %264, %266 : vector<16x64xf32>
    %c10_254 = arith.constant 10 : index
    %c0_255 = arith.constant 0 : index
    %268 = vector.load %arg4[%c10_254, %c0_255] : memref<11x64xf32, #tpu.memory_space<vmem>>, vector<1x64xf32>
    %269 = vector.broadcast %268 : vector<1x64xf32> to vector<16x64xf32>
    %270 = arith.addf %267, %269 : vector<16x64xf32>
    %c32_256 = arith.constant 32 : index
    %c0_257 = arith.constant 0 : index
    %271 = vector.load %arg12[%c32_256, %c0_257] : memref<48x64xf32, #tpu.memory_space<vmem>>, vector<16x64xf32>
    tpu.vector_store %arg12[%c32_256, %c0_257], %270 {strides = array<i32>} : memref<48x64xf32, #tpu.memory_space<vmem>>, vector<16x64xf32>,
    %c32_258 = arith.constant 32 : index
    %c0_259 = arith.constant 0 : index
    %272 = vector.load %arg12[%c32_258, %c0_259] : memref<48x64xf32, #tpu.memory_space<vmem>>, vector<16x64xf32>
    %c0_260 = arith.constant 0 : index
    %c0_261 = arith.constant 0 : index
    %273 = vector.load %arg5[%c0_260, %c0_261] : memref<64x64xf32, #tpu.memory_space<vmem>>, vector<64x64xf32>
    %cst_262 = arith.constant dense<0.000000e+00> : vector<16x64xf32>
    %274 = tpu.matmul %272, %273, %cst_262 {dimension_numbers = #tpu.dot_dimension_numbers<[1], [0], [0], [1], [0, 0, 1, 1], [], []>} : vector<16x64xf32>, vector<64x64xf32>, vector<16x64xf32> -> vector<16x64xf32>
    %c0_263 = arith.constant 0 : index
    %c0_264 = arith.constant 0 : index
    %275 = vector.load %arg6[%c0_263, %c0_264] : memref<1x64xf32, #tpu.memory_space<vmem>>, vector<1x64xf32>
    %276 = vector.broadcast %275 : vector<1x64xf32> to vector<16x64xf32>
    %277 = arith.addf %274, %276 : vector<16x64xf32>
    %cst_265 = arith.constant 0.000000e+00 : f32
    %278 = vector.broadcast %cst_265 : f32 to vector<16x64xf32>
    %279 = arith.maximumf %277, %278 : vector<16x64xf32>
    %c0_266 = arith.constant 0 : index
    %c0_267 = arith.constant 0 : index
    %280 = vector.load %arg7[%c0_266, %c0_267] : memref<64x64xf32, #tpu.memory_space<vmem>>, vector<64x64xf32>
    %cst_268 = arith.constant dense<0.000000e+00> : vector<16x64xf32>
    %281 = tpu.matmul %279, %280, %cst_268 {dimension_numbers = #tpu.dot_dimension_numbers<[1], [0], [0], [1], [0, 0, 1, 1], [], []>} : vector<16x64xf32>, vector<64x64xf32>, vector<16x64xf32> -> vector<16x64xf32>
    %c0_269 = arith.constant 0 : index
    %c0_270 = arith.constant 0 : index
    %282 = vector.load %arg8[%c0_269, %c0_270] : memref<1x64xf32, #tpu.memory_space<vmem>>, vector<1x64xf32>
    %283 = vector.broadcast %282 : vector<1x64xf32> to vector<16x64xf32>
    %284 = arith.addf %281, %283 : vector<16x64xf32>
    %cst_271 = arith.constant 0.000000e+00 : f32
    %285 = vector.broadcast %cst_271 : f32 to vector<16x64xf32>
    %286 = arith.maximumf %284, %285 : vector<16x64xf32>
    %c0_272 = arith.constant 0 : index
    %c0_273 = arith.constant 0 : index
    %287 = vector.load %arg9[%c0_272, %c0_273] : memref<64x24xf32, #tpu.memory_space<vmem>>, vector<64x24xf32>
    %cst_274 = arith.constant dense<0.000000e+00> : vector<16x24xf32>
    %288 = tpu.matmul %286, %287, %cst_274 {dimension_numbers = #tpu.dot_dimension_numbers<[1], [0], [0], [1], [0, 0, 1, 1], [], []>} : vector<16x64xf32>, vector<64x24xf32>, vector<16x24xf32> -> vector<16x24xf32>
    %c0_275 = arith.constant 0 : index
    %c0_276 = arith.constant 0 : index
    %289 = vector.load %arg10[%c0_275, %c0_276] : memref<1x24xf32, #tpu.memory_space<vmem>>, vector<1x24xf32>
    %290 = vector.broadcast %289 : vector<1x24xf32> to vector<16x24xf32>
    %291 = arith.addf %288, %290 : vector<16x24xf32>
    %292 = vector.extract_strided_slice %291 {offsets = [0, 0], sizes = [16, 12], strides = [1, 1]} : vector<16x24xf32> to vector<16x12xf32>
    %c0_277 = arith.constant 0 : index
    %c0_278 = arith.constant 0 : index
    %c0_279 = arith.constant 0 : index
    %293 = vector.load %arg11[%c0_277, %c0_278, %c0_279] : memref<2x16x12xf32, #tpu.memory_space<vmem>>, vector<1x16x12xf32>
    %294 = vector.shape_cast %293 : vector<1x16x12xf32> to vector<16x12xf32>
    %295 = vector.shape_cast %292 : vector<16x12xf32> to vector<1x16x12xf32>
    tpu.vector_store %arg11[%c0_277, %c0_278, %c0_279], %295 {strides = array<i32>} : memref<2x16x12xf32, #tpu.memory_space<vmem>>, vector<1x16x12xf32>,
    %296 = vector.extract_strided_slice %291 {offsets = [0, 12], sizes = [16, 12], strides = [1, 1]} : vector<16x24xf32> to vector<16x12xf32>
    %c1_280 = arith.constant 1 : index
    %c0_281 = arith.constant 0 : index
    %c0_282 = arith.constant 0 : index
    %297 = vector.load %arg11[%c1_280, %c0_281, %c0_282] : memref<2x16x12xf32, #tpu.memory_space<vmem>>, vector<1x16x12xf32>
    %298 = vector.shape_cast %297 : vector<1x16x12xf32> to vector<16x12xf32>
    %299 = vector.shape_cast %296 : vector<16x12xf32> to vector<1x16x12xf32>
    tpu.vector_store %arg11[%c1_280, %c0_281, %c0_282], %299 {strides = array<i32>} : memref<2x16x12xf32, #tpu.memory_space<vmem>>, vector<1x16x12xf32>,
    return
  }
  func.func @transform_0(%arg0: i32) -> (i32, i32, i32) {
    %c0_i32 = arith.constant 0 : i32
    %c0_i32_0 = arith.constant 0 : i32
    %c0_i32_1 = arith.constant 0 : i32
    return %arg0, %c0_i32, %c0_i32_0 : i32, i32, i32
  }
  func.func @transform_1(%arg0: i32) -> (i32, i32, i32) {
    %c0_i32 = arith.constant 0 : i32
    %c0_i32_0 = arith.constant 0 : i32
    %c0_i32_1 = arith.constant 0 : i32
    %c0_i32_2 = arith.constant 0 : i32
    return %c0_i32, %c0_i32_0, %c0_i32_1 : i32, i32, i32
  }
  func.func @transform_2(%arg0: i32) -> (i32, i32) {
    %c0_i32 = arith.constant 0 : i32
    %c0_i32_0 = arith.constant 0 : i32
    %c0_i32_1 = arith.constant 0 : i32
    return %c0_i32, %c0_i32_0 : i32, i32
  }
  func.func @transform_3(%arg0: i32) -> (i32, i32) {
    %c0_i32 = arith.constant 0 : i32
    %c0_i32_0 = arith.constant 0 : i32
    %c0_i32_1 = arith.constant 0 : i32
    return %c0_i32, %c0_i32_0 : i32, i32
  }
  func.func @transform_4(%arg0: i32) -> (i32, i32) {
    %c0_i32 = arith.constant 0 : i32
    %c0_i32_0 = arith.constant 0 : i32
    %c0_i32_1 = arith.constant 0 : i32
    return %c0_i32, %c0_i32_0 : i32, i32
  }
  func.func @transform_5(%arg0: i32) -> (i32, i32) {
    %c0_i32 = arith.constant 0 : i32
    %c0_i32_0 = arith.constant 0 : i32
    %c0_i32_1 = arith.constant 0 : i32
    return %c0_i32, %c0_i32_0 : i32, i32
  }
  func.func @transform_6(%arg0: i32) -> (i32, i32) {
    %c0_i32 = arith.constant 0 : i32
    %c0_i32_0 = arith.constant 0 : i32
    %c0_i32_1 = arith.constant 0 : i32
    return %c0_i32, %c0_i32_0 : i32, i32
  }
  func.func @transform_7(%arg0: i32) -> (i32, i32) {
    %c0_i32 = arith.constant 0 : i32
    %c0_i32_0 = arith.constant 0 : i32
    %c0_i32_1 = arith.constant 0 : i32
    return %c0_i32, %c0_i32_0 : i32, i32
  }
  func.func @transform_8(%arg0: i32) -> (i32, i32) {
    %c0_i32 = arith.constant 0 : i32
    %c0_i32_0 = arith.constant 0 : i32
    %c0_i32_1 = arith.constant 0 : i32
    return %c0_i32, %c0_i32_0 : i32, i32
  }
  func.func @transform_9(%arg0: i32) -> (i32, i32) {
    %c0_i32 = arith.constant 0 : i32
    %c0_i32_0 = arith.constant 0 : i32
    %c0_i32_1 = arith.constant 0 : i32
    return %c0_i32, %c0_i32_0 : i32, i32
  }
  func.func @transform_10(%arg0: i32) -> (i32, i32, i32) {
    %c0_i32 = arith.constant 0 : i32
    %c0_i32_0 = arith.constant 0 : i32
    %c0_i32_1 = arith.constant 0 : i32
    return %arg0, %c0_i32, %c0_i32_0 : i32, i32, i32
  }
}

</mosaic_0001>

<bundles_post_ra>
// kernel: tile.29
= control target key start
LH: loop header
LB: loop body
LE: loop exit
PB: predicated region body
PF: predicated region fallthrough
CT: control target
= control target key end

     0   :  { %vm57_vm0 = vcmask 1047556   ;;  %vm59_vm1 = vcmask 261120   ;;  %vm74_vm2 = vcmask 523520   ;;  %s161_s0 = inlined_call_operand.vmem [shape: f32[11,2,32], index: 0, kind: input, shape index: {}]   ;;  %s162_s1 = inlined_call_operand.vmem [shape: f32[11,64], index: 1, kind: output, shape index: {}]  }
   0x1   :  { %v95_v0 = vld [vmem:[%s161_s0 + $0xe] sm:$0x3]  ;;  %v96_v1 = vld [vmem:[%s161_s0 + $0xc] sm:$0x3]  ;;  %v97_v2 = vld [vmem:[%s161_s0 + $0xa] sm:$0x3] }
   0x2   :  { %23 = vst [vmem:[#allocation0 + $0x38] sm:$0x3] %v95_v0  ;;  %28 = vst [vmem:[#allocation0 + $0x30] sm:$0x3] %v96_v1  ;;  %v98_v3 = vld [vmem:[%s161_s0 + $0x8] sm:$0x3] }
   0x3   :  { %33 = vst [vmem:[#allocation0 + $0x28] sm:$0x3] %v97_v2  ;;  %v99_v4 = vld [vmem:[%s161_s0 + $0x6] sm:$0x3]  ;;  %v100_v5 = vld [vmem:[%s161_s0 + $0x4] sm:$0x3] }
   0x4   :  { %38 = vst [vmem:[#allocation0 + $0x20] sm:$0x3] %v98_v3  ;;  %43 = vst [vmem:[#allocation0 + $0x18] sm:$0x3] %v99_v4  ;;  %v101_v6 = vld [vmem:[%s161_s0 + $0x2] sm:$0x3] }
   0x5   :  { %48 = vst [vmem:[#allocation0 + $0x10] sm:$0x3] %v100_v5  ;;  %v53_v7 = vld [vmem:[%s161_s0] sm:$0x3]  ;;  %52 = vst [vmem:[#allocation0 + $0x8] sm:$0x3] %v101_v6 }
   0x6   :  { %54 = vst [vmem:[#allocation0] sm:$0x3] %v53_v7  ;;  %v92_v8 = vld [vmem:[%s161_s0 + $0x14] sm:$0x3]  ;;  %v93_v9 = vld [vmem:[%s161_s0 + $0x12] sm:$0x3] }
   0x7   :  { %v94_v10 = vld [vmem:[%s161_s0 + $0x10] sm:$0x3]  ;;  %8 = vst [vmem:[#allocation0 + $0x50] sm:$0x3] %v92_v8  ;;  %13 = vst [vmem:[#allocation0 + $0x48] sm:$0x3] %v93_v9 }
   0x8   :  { %18 = vst [vmem:[#allocation0 + $0x40] sm:$0x3] %v94_v10  ;;  %s105_s0 = smov 32  }
   0xb   :  { %v69_v11 = vld [vmem:[#allocation0 + $0x1] ss:$8 sm:$0xf0]   ;;  %v56_v12 = vld [vmem:[#allocation0] ss:$8 sm:$0xf0]  }
   0xd   :  { %v55_v13 = vld [vmem:[#allocation0] ss:$8 sm:$0xf]   ;;  %v67_v14 = vld [vmem:[#allocation0 + $0x1] ss:$8 sm:$0xf]  }
   0xe   :  { %v71_v15 = vsel %vm57_vm0, %v69_v11, %v67_v14  ;;  %v58_v16 = vsel %vm57_vm0, %v56_v12, %v55_v13 }
   0xf   :  { %v62_v17 = vld [vmem:[#allocation0 + $0x40] ss:$8 sm:$0x7]   ;;  %72 = vrot.lane.b32.xlu0 %v71_v15, %s105_s0  ;;  %60 = vst.msk [vmem:[%s162_s1] sm:$0xff] %vm59_vm1, %v58_v16  }
  0x10   :  { %102 = vst.msk [vmem:[%s162_s1 + $0x8] sm:$0x7] %vm59_vm1, %v62_v17   ;;  %v77_v18 = vld [vmem:[#allocation0 + $0x41] ss:$8 sm:$0x7]  }
  0x13   :  { %78 = vrot.lane.b32.xlu0 %v77_v18, %s105_s0 }
  0x81   :  { %v73_v19 = vpop.permute.xlu0 %72  }
  0x82   :  { %75 = vst.msk [vmem:[%s162_s1] sm:$0xff] %vm74_vm2, %v73_v19  }
  0x85   :  { %v79_v20 = vpop.permute.xlu0 %78  }
  0x86   :  { %103 = vst.msk [vmem:[%s162_s1 + $0x8] sm:$0x7] %vm74_vm2, %v79_v20  }

// kernel: inverter_forward.1
= control target key start
LH: loop header
LB: loop body
LE: loop exit
PB: predicated region body
PF: predicated region fallthrough
CT: control target
= control target key end

     0   :  { %vm35_vm0 = vcmask 523264   ;;  %vm42_vm1 = vcmask 195584   ;;  %v5672_v2 = vmov 0.0   ;;  %vm45_vm2 = vcmask 261312   ;;  %s5673_s17 = smov 32   ;;  %s6806_s0 = inlined_call_operand.vmem [shape: f32[2,16,24], index: 0, kind: input, shape index: {}]   ;;  %s6807_s1 = inlined_call_operand.vmem [shape: f32[33,64,64], index: 1, kind: input, shape index: {}]   ;;  %s6808_s2 = inlined_call_operand.vmem [shape: f32[11,64], index: 2, kind: input, shape index: {}]   ;;  %s6809_s3 = inlined_call_operand.vmem [shape: f32[11,64], index: 3, kind: input, shape index: {}]   ;;  %s6810_s4 = inlined_call_operand.vmem [shape: f32[64,64], index: 4, kind: input, shape index: {}]   ;;  %s6811_s6 = inlined_call_operand.vmem [shape: f32[64,64], index: 6, kind: input, shape index: {}]   ;;  %s6812_s8 = inlined_call_operand.vmem [shape: f32[64,24], index: 8, kind: input, shape index: {}]   ;;  %s6813_s5 = inlined_call_operand.vmem [shape: f32[1,64], index: 5, kind: input, shape index: {}]   ;;  %s6814_s7 = inlined_call_operand.vmem [shape: f32[1,64], index: 7, kind: input, shape index: {}]   ;;  %s6815_s9 = inlined_call_operand.vmem [shape: f32[1,24], index: 9, kind: input, shape index: {}]   ;;  %s6816_s10 = inlined_call_operand.vmem [shape: f32[2,16,12], index: 10, kind: output, shape index: {}]  }
   0x1   :  { %v3648_v0 = vld [vmem:[%s6806_s0 + $0x10] sm:$0xff]  ;;  %v3650_v1 = vld [vmem:[%s6807_s1 + $0x40] sm:$0xff]  ;;  %39 = vst.msk [vmem:[#allocation2 + $0x18] sm:$0xff] %vm35_vm0, %v5672_v2  ;;  %37 = vst.msk [vmem:[#allocation2 + $0x8] sm:$0xff] %vm35_vm0, %v5672_v2  ;;  %vm59_vm3 = vcmask 457984   ;;  %vm62_vm4 = vcmask 523712  }
   0x2   :  { %38 = vst.msk [vmem:[#allocation2 + $0x10] sm:$0xff] %vm35_vm0, %v5672_v2  ;;  %53 = vrot.lane.b32.xlu0 %v3648_v0, %s5673_s17  ;;  %v3651_v3 = vld [vmem:[%s6807_s1 + $0x48] sm:$0xff]  ;;  %v40_v4 = vld [vmem:[%s6806_s0] sm:$0xff]  ;;  %v3652_v5 = vld [vmem:[%s6807_s1 + $0x50] sm:$0xff]  ;;  %vm3630_vm5 = vcmask 97280  }
   0x3   :  { %v3649_v6 = vld [vmem:[%s6806_s0 + $0x18] sm:$0xff]  ;;  %v5049_v7 = vpack.c.bf16 %v3651_v3, %v3650_v1  ;;  %43 = vst.msk [vmem:[#allocation2 + $0x20] sm:$0xff] %vm42_vm1, %v40_v4  ;;  %v41_v9 = vld [vmem:[%s6806_s0 + $0x8] sm:$0xff]  ;;  %v3654_v11 = vld [vmem:[%s6807_s1 + $0x60] sm:$0xff] }
   0x4   :  { %v3653_v8 = vld [vmem:[%s6807_s1 + $0x58] sm:$0xff]  ;;  %46 = vst.msk [vmem:[#allocation2 + $0x20] sm:$0xff] %vm45_vm2, %v5672_v2  ;;  %v3655_v12 = vld [vmem:[%s6807_s1 + $0x68] sm:$0xff]  ;;  %v3656_v14 = vld [vmem:[%s6807_s1 + $0x70] sm:$0xff] }
   0x5   :  { %v5053_v10 = vpack.c.bf16 %v3653_v8, %v3652_v5  ;;  %44 = vst.msk [vmem:[#allocation2 + $0x28] sm:$0xff] %vm42_vm1, %v41_v9  ;;  %5050 = vmatprep.subr.bf16.mxu0 %v5049_v7  ;;  %v5057_v13 = vpack.c.bf16 %v3655_v12, %v3654_v11  ;;  %v3657_v15 = vld [vmem:[%s6807_s1 + $0x78] sm:$0xff]  ;;  %v67_v17 = vld [vmem:[%s6807_s1] sm:$0xff]  ;;  %v68_v18 = vld [vmem:[%s6807_s1 + $0x8] sm:$0xff] }
   0x6   :  { %47 = vst.msk [vmem:[#allocation2 + $0x28] sm:$0xff] %vm45_vm2, %v5672_v2  ;;  %55 = vrot.lane.b32.xlu0 %v3649_v6, %s5673_s17  ;;  %5052 = vmatpush3.bf16.msra.mxu0 %v5049_v7  ;;  %v5061_v16 = vpack.c.bf16 %v3657_v15, %v3656_v14  ;;  %v5065_v19 = vpack.c.bf16 %v68_v18, %v67_v17  ;;  %v69_v23 = vld [vmem:[%s6807_s1 + $0x10] sm:$0xff]  ;;  %v70_v24 = vld [vmem:[%s6807_s1 + $0x18] sm:$0xff]  ;;  %v71_v28 = vld [vmem:[%s6807_s1 + $0x20] sm:$0xff] }
   0x7   :  { %5054 = vmatprep.subr.bf16.mxu0 %v5053_v10  ;;  %v5069_v25 = vpack.c.bf16 %v70_v24, %v69_v23  ;;  %v72_v29 = vld [vmem:[%s6807_s1 + $0x28] sm:$0xff]  ;;  %v73_v31 = vld [vmem:[%s6807_s1 + $0x30] sm:$0xff]  ;;  %v74_v32 = vld [vmem:[%s6807_s1 + $0x38] sm:$0xff] }
   0x8   :  { %v5073_v30 = vpack.c.bf16 %v72_v29, %v71_v28  ;;  %v5077_v33 = vpack.c.bf16 %v74_v32, %v73_v31  ;;  %v3662_v34 = vld [vmem:[%s6807_s1 + $0x80] sm:$0xff]  ;;  %v3663_v35 = vld [vmem:[%s6807_s1 + $0x88] sm:$0xff]  ;;  %v3664_v37 = vld [vmem:[%s6807_s1 + $0x90] sm:$0xff] }
   0x9   :  { %v5081_v36 = vpack.c.bf16 %v3663_v35, %v3662_v34  ;;  %v3665_v38 = vld [vmem:[%s6807_s1 + $0x98] sm:$0xff]  ;;  %v3666_v42 = vld [vmem:[%s6807_s1 + $0xa0] sm:$0xff]  ;;  %v3667_v43 = vld [vmem:[%s6807_s1 + $0xa8] sm:$0xff] }
   0xa   :  { %5056 = vmatpush3.bf16.msra.mxu0 %v5053_v10  ;;  %v5085_v40 = vpack.c.bf16 %v3665_v38, %v3664_v37  ;;  %v5089_v44 = vpack.c.bf16 %v3667_v43, %v3666_v42  ;;  %v3668_v45 = vld [vmem:[%s6807_s1 + $0xb0] sm:$0xff]  ;;  %v3669_v46 = vld [vmem:[%s6807_s1 + $0xb8] sm:$0xff]  ;;  %v3682_v49 = vld [vmem:[%s6807_s1 + $0x100] sm:$0xff] }
   0xb   :  { %5058 = vmatprep.subr.bf16.mxu0 %v5057_v13  ;;  %v5093_v47 = vpack.c.bf16 %v3669_v46, %v3668_v45  ;;  %v3683_v50 = vld [vmem:[%s6807_s1 + $0x108] sm:$0xff]  ;;  %v3684_v52 = vld [vmem:[%s6807_s1 + $0x110] sm:$0xff]  ;;  %v3685_v53 = vld [vmem:[%s6807_s1 + $0x118] sm:$0xff] }
   0xc   :  { %v5097_v51 = vpack.c.bf16 %v3683_v50, %v3682_v49  ;;  %v5101_v54 = vpack.c.bf16 %v3685_v53, %v3684_v52  ;;  %v3686_v55 = vld [vmem:[%s6807_s1 + $0x120] sm:$0xff]  ;;  %v3687_v56 = vld [vmem:[%s6807_s1 + $0x128] sm:$0xff]  ;;  %v3688_v58 = vld [vmem:[%s6807_s1 + $0x130] sm:$0xff] }
   0xd   :  { %v5105_v57 = vpack.c.bf16 %v3687_v56, %v3686_v55  ;;  %v3689_v59 = vld [vmem:[%s6807_s1 + $0x138] sm:$0xff]  ;;  %v3674_v61 = vld [vmem:[%s6807_s1 + $0xc0] sm:$0xff]  ;;  %v3675_v62 = vld [vmem:[%s6807_s1 + $0xc8] sm:$0xff] }
   0xe   :  { %5060 = vmatpush3.bf16.msra.mxu0 %v5057_v13  ;;  %5098 = vmatprep.subr.bf16.mxu1 %v5097_v51  ;;  %v5109_v60 = vpack.c.bf16 %v3689_v59, %v3688_v58  ;;  %v5113_v63 = vpack.c.bf16 %v3675_v62, %v3674_v61  ;;  %v3672_v0 = vld [vmem:[%s6808_s2] ss:$0 sm:$0xff]  ;;  %v3676_v10 = vld [vmem:[%s6807_s1 + $0xd0] sm:$0xff]  ;;  %v3677_v11 = vld [vmem:[%s6807_s1 + $0xd8] sm:$0xff] }
   0xf   :  { %5062 = vmatprep.subr.bf16.mxu0 %v5061_v16  ;;  %5100 = vmatpush3.bf16.msra.mxu1 %v5097_v51  ;;  %v5117_v14 = vpack.c.bf16 %v3677_v11, %v3676_v10  ;;  %v3678_v15 = vld [vmem:[%s6807_s1 + $0xe0] sm:$0xff]  ;;  %v3695_v23 = vld [vmem:[%s6807_s1 + $0x148] sm:$0xff]  ;;  %v3701_v34 = vld [vmem:[%s6807_s1 + $0x178] sm:$0xff] }
  0x10   :  { %5102 = vmatprep.subr.bf16.mxu1 %v5101_v54  ;;  %v3698_v29 = vld [vmem:[%s6807_s1 + $0x160] sm:$0xff]  ;;  %v3715_v38 = vld [vmem:[%s6807_s1 + $0x1c8] sm:$0xff]  ;;  %v3720_v46 = vld [vmem:[%s6807_s1 + $0x1f0] sm:$0xff] }
  0x11   :  { %v3714_v37 = vld [vmem:[%s6807_s1 + $0x1c0] sm:$0xff]  ;;  %v3707_v50 = vld [vmem:[%s6807_s1 + $0x188] sm:$0xff]  ;;  %v3713_v10 = vld [vmem:[%s6807_s1 + $0x1b8] sm:$0xff] }
  0x12   :  { %5064 = vmatpush3.bf16.msra.mxu0 %v5061_v16  ;;  %v3679_v16 = vld [vmem:[%s6807_s1 + $0xe8] sm:$0xff]  ;;  %v3718_v43 = vld [vmem:[%s6807_s1 + $0x1e0] sm:$0xff] }
  0x13   :  { %5066 = vmatprep.subr.bf16.mxu0 %v5065_v19  ;;  %5104 = vmatpush3.bf16.msra.mxu1 %v5101_v54  ;;  %v5121_v18 = vpack.c.bf16 %v3679_v16, %v3678_v15  ;;  %v3706_v49 = vld [vmem:[%s6807_s1 + $0x180] sm:$0xff]  ;;  %v3728_v15 = vld [vmem:[%s6807_s1 + $0x210] sm:$0xff]  ;;  %v3729_v16 = vld [vmem:[%s6807_s1 + $0x218] sm:$0xff] }
  0x14   :  { %5106 = vmatprep.subr.bf16.mxu1 %v5105_v57  ;;  %v5161_v51 = vpack.c.bf16 %v3707_v50, %v3706_v49  ;;  %v3704_v52 = vld [vmem:[%s6808_s2 + $0x1] ss:$0 sm:$0xff] }
  0x15   :  { %v3705_v54 = vld [vmem:[%s6809_s3 + $0x1] ss:$0 sm:$0xff] }
  0x17   :  { %5108 = vmatpush3.bf16.msra.mxu1 %v5105_v57 }
  0x18   :  { %5110 = vmatprep.subr.bf16.mxu1 %v5109_v60 }
  0x1b   :  { %5112 = vmatpush3.bf16.msra.mxu1 %v5109_v60 }
  0x1c   :  { %5114 = vmatprep.subr.bf16.mxu1 %v5113_v63 }
  0x74   :  { %v54_v20 = vpop.permute.xlu0 %53 }
  0x75   :  { %60 = vst.msk [vmem:[#allocation2 + $0x20] sm:$0xff] %vm59_vm3, %v54_v20  ;;  %v3681_v20 = vld [vmem:[%s6807_s1 + $0xf8] sm:$0xff] }
  0x76   :  { %63 = vst.msk [vmem:[#allocation2 + $0x20] sm:$0xff] %vm62_vm4, %v5672_v2 }
  0x78   :  { %v56_v21 = vpop.permute.xlu0 %55 }
  0x79   :  { %61 = vst.msk [vmem:[#allocation2 + $0x28] sm:$0xff] %vm59_vm3, %v56_v21 }
  0x7a   :  { %64 = vst.msk [vmem:[#allocation2 + $0x28] sm:$0xff] %vm62_vm4, %v5672_v2  ;;  %v3673_v2 = vld [vmem:[%s6809_s3] ss:$0 sm:$0xff] }
  0x7d   :  { %v75_v22 = vld [vmem:[#allocation2 + $0x1f] sm:$0xff] }
  0x7e   :  { %4381 = vmatprep.mubr.msk.f32.mxu0 %vm35_vm0, %v75_v22  ;;  %v65_v26 = vld [vmem:[#allocation2 + $0x1e] sm:$0xff] }
  0x7f   :  { %v248_v41 = vld [vmem:[#allocation2 + $0x20] sm:$0xff] }
  0x80   :  { %v3694_v22 = vld [vmem:[%s6807_s1 + $0x140] sm:$0xff] }
  0x81   :  { %v76_v27 = vld [vmem:[#allocation2 + $0x27] sm:$0xff]  ;;  %v5129_v24 = vpack.c.bf16 %v3695_v23, %v3694_v22  ;;  %v3732_v23 = vld [vmem:[%s6807_s1 + $0x230] sm:$0xff] }
  0x82   :  { %4382 = vmatmul.mubr.msk.f32.vlgmr.msra.gmra.mrb[0].mxu0 %vm35_vm0, %v76_v27  ;;  %v66_v39 = vld [vmem:[#allocation2 + $0x26] sm:$0xff] }
  0x83   :  { %5068 = vmatpush3.bf16.msra.mxu0 %v5065_v19  ;;  %4400 = vmatprep.mubr.msk.f32.mxu0 %vm35_vm0, %v65_v26  ;;  %v249_v48 = vld [vmem:[#allocation2 + $0x28] sm:$0xff]  ;;  %v3680_v19 = vld [vmem:[%s6807_s1 + $0xf0] sm:$0xff]  ;;  %v3697_v26 = vld [vmem:[%s6807_s1 + $0x158] sm:$0xff] }
  0x84   :  { %5070 = vmatprep.subr.bf16.mxu0 %v5069_v25  ;;  %v5125_v21 = vpack.c.bf16 %v3681_v20, %v3680_v19  ;;  %v3730_v19 = vld [vmem:[%s6807_s1 + $0x220] sm:$0xff]  ;;  %v3731_v20 = vld [vmem:[%s6807_s1 + $0x228] sm:$0xff] }
  0x85   :  { %v5185_v22 = vpack.c.bf16 %v3731_v20, %v3730_v19  ;;  %v3780_v20 = vld [vmem:[%s6807_s1 + $0x350] sm:$0xff] }
  0x87   :  { %5072 = vmatpush3.bf16.msra.mxu0 %v5069_v25  ;;  %v3696_v25 = vld [vmem:[%s6807_s1 + $0x150] sm:$0xff] }
  0x88   :  { %5074 = vmatprep.subr.bf16.mxu0 %v5073_v30  ;;  %v5133_v27 = vpack.c.bf16 %v3697_v26, %v3696_v25 }
  0x8b   :  { %5076 = vmatpush3.bf16.msra.mxu0 %v5073_v30  ;;  %v3699_v30 = vld [vmem:[%s6807_s1 + $0x168] sm:$0xff] }
  0x8c   :  { %5078 = vmatprep.subr.bf16.mxu0 %v5077_v33  ;;  %v5137_v32 = vpack.c.bf16 %v3699_v30, %v3698_v29  ;;  %v3748_v30 = vld [vmem:[%s6807_s1 + $0x290] sm:$0xff] }
  0x8f   :  { %5080 = vmatpush3.bf16.msra.mxu0 %v5077_v33  ;;  %v3700_v33 = vld [vmem:[%s6807_s1 + $0x170] sm:$0xff] }
  0x90   :  { %5082 = vmatprep.subr.bf16.mxu0 %v5081_v36  ;;  %v5141_v35 = vpack.c.bf16 %v3701_v34, %v3700_v33  ;;  %v3750_v33 = vld [vmem:[%s6807_s1 + $0x2a0] sm:$0xff]  ;;  %v3751_v34 = vld [vmem:[%s6807_s1 + $0x2a8] sm:$0xff] }
  0x92   :  { %4401 = vmatmul.mubr.msk.f32.vlgmr.msra.gmra.mrb[0].mxu0 %vm35_vm0, %v66_v39  ;;  %v5145_v39 = vpack.c.bf16 %v3715_v38, %v3714_v37  ;;  %v3753_v37 = vld [vmem:[%s6807_s1 + $0x2b8] sm:$0xff] }
  0x93   :  { %5084 = vmatpush3.bf16.msra.mxu0 %v5081_v36  ;;  %4419 = vmatprep.mubr.msk.f32.mxu0 %vm35_vm0, %v248_v41  ;;  %v3717_v41 = vld [vmem:[%s6807_s1 + $0x1d8] sm:$0xff] }
  0x94   :  { %5086 = vmatprep.subr.bf16.mxu0 %v5085_v40  ;;  %v6023_v38 = vld [vmem:[#allocation2 + $0x17] sm:$0xff] }
  0x97   :  { %5088 = vmatpush3.bf16.msra.mxu0 %v5085_v40  ;;  %v3716_v40 = vld [vmem:[%s6807_s1 + $0x1d0] sm:$0xff] }
  0x98   :  { %5090 = vmatprep.subr.bf16.mxu0 %v5089_v44  ;;  %v5149_v42 = vpack.c.bf16 %v3717_v41, %v3716_v40  ;;  %v3738_v40 = vld [vmem:[%s6807_s1 + $0x240] sm:$0xff]  ;;  %v3739_v41 = vld [vmem:[%s6807_s1 + $0x248] sm:$0xff] }
  0x9b   :  { %5092 = vmatpush3.bf16.msra.mxu0 %v5089_v44  ;;  %v3719_v44 = vld [vmem:[%s6807_s1 + $0x1e8] sm:$0xff] }
  0x9c   :  { %5094 = vmatprep.subr.bf16.mxu0 %v5093_v47  ;;  %v5153_v45 = vpack.c.bf16 %v3719_v44, %v3718_v43  ;;  %v3736_v43 = vld [vmem:[%s6808_s2 + $0x2] ss:$0 sm:$0xff] }
  0x9f   :  { %5096 = vmatpush3.bf16.msra.mxu0 %v5093_v47  ;;  %v3721_v47 = vld [vmem:[%s6807_s1 + $0x1f8] sm:$0xff] }
  0xa0   :  { %5146 = vmatprep.subr.bf16.mxu0 %v5145_v39 }
  0xa2   :  { %4420 = vmatmul.mubr.msk.f32.vlgmr.msra.gmra.mrb[0].mxu0 %vm35_vm0, %v249_v48  ;;  %v5157_v48 = vpack.c.bf16 %v3721_v47, %v3720_v46 }
  0xa3   :  { %5148 = vmatpush3.bf16.msra.mxu0 %v5145_v39 }
  0xa4   :  { %5150 = vmatprep.subr.bf16.mxu0 %v5149_v42 }
  0xa7   :  { %5152 = vmatpush3.bf16.msra.mxu0 %v5149_v42  ;;  %v5209_v42 = vpack.c.bf16 %v3739_v41, %v3738_v40 }
  0xa8   :  { %5154 = vmatprep.subr.bf16.mxu0 %v5153_v45 }
  0xab   :  { %5156 = vmatpush3.bf16.msra.mxu0 %v5153_v45  ;;  %v3737_v45 = vld [vmem:[%s6809_s3 + $0x2] ss:$0 sm:$0xff] }
  0xac   :  { %5158 = vmatprep.subr.bf16.mxu0 %v5157_v48 }
  0xaf   :  { %5160 = vmatpush3.bf16.msra.mxu0 %v5157_v48 }
  0xb0   :  { %5162 = vmatprep.subr.bf16.mxu0 %v5161_v51 }
 0x175   :  { %v4421_v1 = vpop.f32.mrb[0].mxu0 }
 0x176   :  { %v348_v3 = vmul.f32 %v4421_v1, %v3672_v0  ;;  %v331_v4 = vpop.f32.mrb[1].mxu0  ;;  %v3709_v1 = vld [vmem:[%s6807_s1 + $0x198] sm:$0xff] }
 0x177   :  { %v347_v5 = vmul.f32 %v3672_v0, %v331_v4  ;;  %v3708_v0 = vld [vmem:[%s6807_s1 + $0x190] sm:$0xff] }
 0x178   :  { %v355_v6 = vadd.f32 %v3673_v2, %v348_v3  ;;  %v5165_v4 = vpack.c.bf16 %v3709_v1, %v3708_v0  ;;  %v3745_v0 = vld [vmem:[%s6807_s1 + $0x278] sm:$0xff] }
 0x179   :  { %v354_v7 = vadd.f32 %v3673_v2, %v347_v5  ;;  %v3710_v5 = vld [vmem:[%s6807_s1 + $0x1a0] sm:$0xff] }
 0x17a   :  { %v357_v8 = vmax.f32 %v355_v6, 0.0  ;;  %v3711_v6 = vld [vmem:[%s6807_s1 + $0x1a8] sm:$0xff] }
 0x17b   :  { %v356_v9 = vmax.f32 %v354_v7, 0.0 }
 0x17c   :  { %359 = vst.msk [vmem:[#allocation2 + $0x28] sm:$0xff] %vm35_vm0, %v357_v8  ;;  %v5169_v8 = vpack.c.bf16 %v3711_v6, %v3710_v5  ;;  %v3760_v5 = vld [vmem:[%s6807_s1 + $0x2d0] sm:$0xff]  ;;  %v3761_v6 = vld [vmem:[%s6807_s1 + $0x2d8] sm:$0xff] }
 0x17d   :  { %358 = vst.msk [vmem:[#allocation2 + $0x20] sm:$0xff] %vm35_vm0, %v356_v9  ;;  %v3712_v9 = vld [vmem:[%s6807_s1 + $0x1b0] sm:$0xff] }
 0x17e   :  { %v5173_v11 = vpack.c.bf16 %v3713_v10, %v3712_v9  ;;  %v3762_v9 = vld [vmem:[%s6807_s1 + $0x2e0] sm:$0xff]  ;;  %v3763_v10 = vld [vmem:[%s6807_s1 + $0x2e8] sm:$0xff] }
 0x183   :  { %v545_v36 = vld [vmem:[#allocation2 + $0x28] sm:$0xff] }
 0x184   :  { %v372_v12 = vld [vmem:[#allocation2 + $0x27] sm:$0xff]  ;;  %v371_v13 = vld [vmem:[#allocation2 + $0x1f] sm:$0xff] }
 0x185   :  { %4438 = vmatprep.mubr.msk.f32.mxu1 %vm35_vm0, %v371_v13  ;;  %v360_v17 = vld [vmem:[#allocation2 + $0x1e] sm:$0xff]  ;;  %v361_v28 = vld [vmem:[#allocation2 + $0x26] sm:$0xff] }
 0x186   :  { %4439 = vmatmul.mubr.msk.f32.vlgmr.msra.gmra.mrb[0].mxu1 %vm35_vm0, %v372_v12  ;;  %v544_v31 = vld [vmem:[#allocation2 + $0x20] sm:$0xff]  ;;  %v3727_v13 = vld [vmem:[%s6807_s1 + $0x208] sm:$0xff] }
 0x187   :  { %5116 = vmatpush3.bf16.msra.mxu1 %v5113_v63  ;;  %4457 = vmatprep.mubr.msk.f32.mxu1 %vm35_vm0, %v360_v17  ;;  %v3726_v12 = vld [vmem:[%s6807_s1 + $0x200] sm:$0xff]  ;;  %v5181_v17 = vpack.c.bf16 %v3729_v16, %v3728_v15 }
 0x188   :  { %5118 = vmatprep.subr.bf16.mxu1 %v5117_v14 }
 0x18b   :  { %5120 = vmatpush3.bf16.msra.mxu1 %v5117_v14  ;;  %v5177_v14 = vpack.c.bf16 %v3727_v13, %v3726_v12  ;;  %v5233_v12 = vpack.c.bf16 %v3763_v10, %v3762_v9  ;;  %v3764_v13 = vld [vmem:[%s6807_s1 + $0x2f0] sm:$0xff]  ;;  %v3810_v10 = vld [vmem:[%s6807_s1 + $0x400] sm:$0xff] }
 0x18c   :  { %5122 = vmatprep.subr.bf16.mxu1 %v5121_v18 }
 0x18f   :  { %5124 = vmatpush3.bf16.msra.mxu1 %v5121_v18 }
 0x190   :  { %5126 = vmatprep.subr.bf16.mxu1 %v5125_v21 }
 0x193   :  { %5128 = vmatpush3.bf16.msra.mxu1 %v5125_v21 }
 0x194   :  { %5130 = vmatprep.subr.bf16.mxu1 %v5129_v24 }
 0x196   :  { %4458 = vmatmul.mubr.msk.f32.vlgmr.msra.gmra.mrb[0].mxu1 %vm35_vm0, %v361_v28  ;;  %v3747_v28 = vld [vmem:[%s6807_s1 + $0x288] sm:$0xff] }
 0x197   :  { %5132 = vmatpush3.bf16.msra.mxu1 %v5129_v24  ;;  %4476 = vmatprep.mubr.msk.f32.mxu1 %vm35_vm0, %v544_v31  ;;  %v3733_v24 = vld [vmem:[%s6807_s1 + $0x238] sm:$0xff] }
 0x198   :  { %5134 = vmatprep.subr.bf16.mxu1 %v5133_v27  ;;  %v5189_v25 = vpack.c.bf16 %v3733_v24, %v3732_v23  ;;  %v3782_v23 = vld [vmem:[%s6807_s1 + $0x360] sm:$0xff]  ;;  %v3783_v24 = vld [vmem:[%s6807_s1 + $0x368] sm:$0xff] }
 0x19b   :  { %5136 = vmatpush3.bf16.msra.mxu1 %v5133_v27  ;;  %v3746_v27 = vld [vmem:[%s6807_s1 + $0x280] sm:$0xff] }
 0x19c   :  { %5138 = vmatprep.subr.bf16.mxu1 %v5137_v32  ;;  %v5193_v29 = vpack.c.bf16 %v3747_v28, %v3746_v27  ;;  %v3785_v27 = vld [vmem:[%s6807_s1 + $0x378] sm:$0xff] }
 0x19f   :  { %5140 = vmatpush3.bf16.msra.mxu1 %v5137_v32 }
 0x1a0   :  { %5142 = vmatprep.subr.bf16.mxu1 %v5141_v35 }
 0x1a3   :  { %5144 = vmatpush3.bf16.msra.mxu1 %v5141_v35  ;;  %v5201_v35 = vpack.c.bf16 %v3751_v34, %v3750_v33  ;;  %v3769_v34 = vld [vmem:[%s6809_s3 + $0x3] ss:$0 sm:$0xff] }
 0x1a4   :  { %5194 = vmatprep.subr.bf16.mxu1 %v5193_v29 }
 0x1a6   :  { %4477 = vmatmul.mubr.msk.f32.vlgmr.msra.gmra.mrb[0].mxu1 %vm35_vm0, %v545_v36 }
 0x1a7   :  { %5196 = vmatpush3.bf16.msra.mxu1 %v5193_v29  ;;  %4552 = vmatprep.mubr.msk.f32.mxu1 %vm35_vm0, %v6023_v38  ;;  %v3770_v29 = vld [vmem:[%s6807_s1 + $0x300] sm:$0xff] }
 0x279   :  { %v4478_v53 = vpop.f32.mrb[0].mxu1 }
 0x27a   :  { %v644_v55 = vmul.f32 %v4478_v53, %v3704_v52  ;;  %v627_v56 = vpop.f32.mrb[1].mxu1 }
 0x27b   :  { %v643_v57 = vmul.f32 %v3704_v52, %v627_v56  ;;  %v3741_v56 = vld [vmem:[%s6807_s1 + $0x258] sm:$0xff] }
 0x27c   :  { %v651_v58 = vadd.f32 %v3705_v54, %v644_v55  ;;  %v3740_v55 = vld [vmem:[%s6807_s1 + $0x250] sm:$0xff] }
 0x27d   :  { %v650_v59 = vadd.f32 %v3705_v54, %v643_v57  ;;  %v5213_v57 = vpack.c.bf16 %v3741_v56, %v3740_v55  ;;  %v3777_v55 = vld [vmem:[%s6807_s1 + $0x338] sm:$0xff] }
 0x27e   :  { %v653_v60 = vmax.f32 %v651_v58, 0.0  ;;  %v6047_v58 = vld [vmem:[#allocation2 + $0xe] sm:$0xff] }
 0x27f   :  { %v652_v61 = vmax.f32 %v650_v59, 0.0 }
 0x280   :  { %v655_v62 = vadd.f32 %v653_v60, %v545_v36  ;;  %v3752_v36 = vld [vmem:[%s6807_s1 + $0x2b0] sm:$0xff]  ;;  %v3742_v60 = vld [vmem:[%s6807_s1 + $0x260] sm:$0xff] }
 0x281   :  { %v654_v63 = vadd.f32 %v652_v61, %v544_v31  ;;  %v3749_v31 = vld [vmem:[%s6807_s1 + $0x298] sm:$0xff]  ;;  %v5205_v39 = vpack.c.bf16 %v3753_v37, %v3752_v36  ;;  %v3743_v61 = vld [vmem:[%s6807_s1 + $0x268] sm:$0xff] }
 0x282   :  { %657 = vst.msk [vmem:[#allocation2 + $0x28] sm:$0xff] %vm35_vm0, %v655_v62  ;;  %v5197_v32 = vpack.c.bf16 %v3749_v31, %v3748_v30  ;;  %v5217_v62 = vpack.c.bf16 %v3743_v61, %v3742_v60  ;;  %v3771_v30 = vld [vmem:[%s6807_s1 + $0x308] sm:$0xff]  ;;  %v3792_v61 = vld [vmem:[%s6807_s1 + $0x390] sm:$0xff] }
 0x283   :  { %656 = vst.msk [vmem:[#allocation2 + $0x20] sm:$0xff] %vm35_vm0, %v654_v63  ;;  %v3744_v63 = vld [vmem:[%s6807_s1 + $0x270] sm:$0xff]  ;;  %v5257_v31 = vpack.c.bf16 %v3771_v30, %v3770_v29 }
 0x284   :  { %5198 = vmatprep.subr.bf16.mxu1 %v5197_v32  ;;  %v5221_v1 = vpack.c.bf16 %v3745_v0, %v3744_v63 }
 0x285   :  { %5200 = vmatpush3.bf16.msra.mxu1 %v5197_v32  ;;  %v3768_v32 = vld [vmem:[%s6808_s2 + $0x3] ss:$0 sm:$0xff] }
 0x286   :  { %5202 = vmatprep.subr.bf16.mxu1 %v5201_v35 }
 0x289   :  { %v843_v26 = vld [vmem:[#allocation2 + $0x28] sm:$0xff]  ;;  %5204 = vmatpush3.bf16.msra.mxu1 %v5201_v35 }
 0x28a   :  { %v669_v2 = vld [vmem:[#allocation2 + $0x1d] sm:$0xff]  ;;  %v670_v3 = vld [vmem:[#allocation2 + $0x25] sm:$0xff]  ;;  %5206 = vmatprep.subr.bf16.mxu1 %v5205_v39 }
 0x28b   :  { %4495 = vmatprep.mubr.msk.f32.mxu0 %vm35_vm0, %v669_v2  ;;  %v658_v7 = vld [vmem:[#allocation2 + $0x1a] sm:$0xff]  ;;  %v659_v18 = vld [vmem:[#allocation2 + $0x22] sm:$0xff] }
 0x28c   :  { %4496 = vmatmul.mubr.msk.f32.vlgmr.msra.gmra.mrb[2].mxu0 %vm35_vm0, %v670_v3  ;;  %v842_v21 = vld [vmem:[#allocation2 + $0x20] sm:$0xff]  ;;  %v3759_v3 = vld [vmem:[%s6807_s1 + $0x2c8] sm:$0xff] }
 0x28d   :  { %5164 = vmatpush3.bf16.msra.mxu0 %v5161_v51  ;;  %4514 = vmatprep.mubr.msk.f32.mxu0 %vm35_vm0, %v658_v7  ;;  %v3758_v2 = vld [vmem:[%s6807_s1 + $0x2c0] sm:$0xff]  ;;  %v6076_v7 = vld [vmem:[#allocation2 + $0x16] sm:$0xff] }
 0x28e   :  { %5166 = vmatprep.subr.bf16.mxu0 %v5165_v4  ;;  %5208 = vmatpush3.bf16.msra.mxu1 %v5205_v39 }
 0x28f   :  { %5210 = vmatprep.subr.bf16.mxu1 %v5209_v42 }
 0x291   :  { %5168 = vmatpush3.bf16.msra.mxu0 %v5165_v4  ;;  %v5225_v4 = vpack.c.bf16 %v3759_v3, %v3758_v2  ;;  %v3795_v2 = vld [vmem:[%s6807_s1 + $0x3a8] sm:$0xff] }
 0x292   :  { %5170 = vmatprep.subr.bf16.mxu0 %v5169_v8 }
 0x295   :  { %5172 = vmatpush3.bf16.msra.mxu0 %v5169_v8  ;;  %v5229_v8 = vpack.c.bf16 %v3761_v6, %v3760_v5  ;;  %v3796_v5 = vld [vmem:[%s6807_s1 + $0x3b0] sm:$0xff]  ;;  %v3797_v6 = vld [vmem:[%s6807_s1 + $0x3b8] sm:$0xff] }
 0x296   :  { %5174 = vmatprep.subr.bf16.mxu0 %v5173_v11 }
 0x299   :  { %5176 = vmatpush3.bf16.msra.mxu0 %v5173_v11 }
 0x29a   :  { %5178 = vmatprep.subr.bf16.mxu0 %v5177_v14 }
 0x29c   :  { %4515 = vmatmul.mubr.msk.f32.vlgmr.msra.gmra.mrb[2].mxu0 %vm35_vm0, %v659_v18  ;;  %v3779_v18 = vld [vmem:[%s6807_s1 + $0x348] sm:$0xff] }
 0x29d   :  { %5180 = vmatpush3.bf16.msra.mxu0 %v5177_v14  ;;  %4533 = vmatprep.mubr.msk.f32.mxu0 %vm35_vm0, %v842_v21  ;;  %v3765_v14 = vld [vmem:[%s6807_s1 + $0x2f8] sm:$0xff] }
 0x29e   :  { %5182 = vmatprep.subr.bf16.mxu0 %v5181_v17  ;;  %v5237_v15 = vpack.c.bf16 %v3765_v14, %v3764_v13  ;;  %v3812_v13 = vld [vmem:[%s6807_s1 + $0x410] sm:$0xff]  ;;  %v3813_v14 = vld [vmem:[%s6807_s1 + $0x418] sm:$0xff] }
 0x2a1   :  { %5184 = vmatpush3.bf16.msra.mxu0 %v5181_v17  ;;  %v3778_v17 = vld [vmem:[%s6807_s1 + $0x340] sm:$0xff] }
 0x2a2   :  { %5186 = vmatprep.subr.bf16.mxu0 %v5185_v22  ;;  %v5241_v19 = vpack.c.bf16 %v3779_v18, %v3778_v17  ;;  %v3816_v18 = vld [vmem:[%s6807_s1 + $0x430] sm:$0xff] }
 0x2a5   :  { %5188 = vmatpush3.bf16.msra.mxu0 %v5185_v22 }
 0x2a6   :  { %5190 = vmatprep.subr.bf16.mxu0 %v5189_v25 }
 0x2a9   :  { %5192 = vmatpush3.bf16.msra.mxu0 %v5189_v25  ;;  %v5249_v25 = vpack.c.bf16 %v3783_v24, %v3782_v23  ;;  %v3800_v24 = vld [vmem:[%s6808_s2 + $0x4] ss:$0 sm:$0xff] }
 0x2aa   :  { %5242 = vmatprep.subr.bf16.mxu0 %v5241_v19 }
 0x2ac   :  { %4534 = vmatmul.mubr.msk.f32.vlgmr.msra.gmra.mrb[2].mxu0 %vm35_vm0, %v843_v26 }
 0x2ad   :  { %5244 = vmatpush3.bf16.msra.mxu0 %v5241_v19  ;;  %v3817_v19 = vld [vmem:[%s6807_s1 + $0x438] sm:$0xff] }
 0x37f   :  { %v4535_v44 = vpop.f32.mrb[2].mxu0 }
 0x380   :  { %v942_v46 = vmul.f32 %v4535_v44, %v3736_v43  ;;  %v925_v47 = vpop.f32.mrb[3].mxu0 }
 0x381   :  { %v941_v48 = vmul.f32 %v3736_v43, %v925_v47 }
 0x382   :  { %v949_v49 = vadd.f32 %v3737_v45, %v942_v46  ;;  %v3773_v46 = vld [vmem:[%s6807_s1 + $0x318] sm:$0xff] }
 0x383   :  { %v948_v50 = vadd.f32 %v3737_v45, %v941_v48  ;;  %v3772_v45 = vld [vmem:[%s6807_s1 + $0x310] sm:$0xff] }
 0x384   :  { %v951_v51 = vmax.f32 %v949_v49, 0.0  ;;  %v5261_v49 = vpack.c.bf16 %v3773_v46, %v3772_v45  ;;  %v3808_v46 = vld [vmem:[%s6807_s1 + $0x3f0] sm:$0xff] }
 0x385   :  { %v950_v52 = vmax.f32 %v948_v50, 0.0  ;;  %v3774_v50 = vld [vmem:[%s6807_s1 + $0x320] sm:$0xff] }
 0x386   :  { %v953_v53 = vadd.f32 %v951_v51, %v843_v26  ;;  %v3784_v26 = vld [vmem:[%s6807_s1 + $0x370] sm:$0xff]  ;;  %v3775_v51 = vld [vmem:[%s6807_s1 + $0x328] sm:$0xff] }
 0x387   :  { %v952_v54 = vadd.f32 %v950_v52, %v842_v21  ;;  %v3781_v21 = vld [vmem:[%s6807_s1 + $0x358] sm:$0xff]  ;;  %v5253_v28 = vpack.c.bf16 %v3785_v27, %v3784_v26  ;;  %v3801_v26 = vld [vmem:[%s6809_s3 + $0x4] ss:$0 sm:$0xff] }
 0x388   :  { %955 = vst.msk [vmem:[#allocation2 + $0x28] sm:$0xff] %vm35_vm0, %v953_v53  ;;  %v5245_v22 = vpack.c.bf16 %v3781_v21, %v3780_v20  ;;  %v5265_v53 = vpack.c.bf16 %v3775_v51, %v3774_v50  ;;  %v5301_v20 = vpack.c.bf16 %v3817_v19, %v3816_v18  ;;  %v3802_v21 = vld [vmem:[%s6807_s1 + $0x3c0] sm:$0xff]  ;;  %v3823_v50 = vld [vmem:[%s6807_s1 + $0x448] sm:$0xff] }
 0x389   :  { %954 = vst.msk [vmem:[#allocation2 + $0x20] sm:$0xff] %vm35_vm0, %v952_v54  ;;  %v3776_v54 = vld [vmem:[%s6807_s1 + $0x330] sm:$0xff]  ;;  %v3833_v18 = vld [vmem:[%s6809_s3 + $0x5] ss:$0 sm:$0xff] }
 0x38a   :  { %5246 = vmatprep.subr.bf16.mxu0 %v5245_v22  ;;  %v5269_v56 = vpack.c.bf16 %v3777_v55, %v3776_v54 }
 0x38b   :  { %5248 = vmatpush3.bf16.msra.mxu0 %v5245_v22  ;;  %v3803_v22 = vld [vmem:[%s6807_s1 + $0x3c8] sm:$0xff] }
 0x38c   :  { %5250 = vmatprep.subr.bf16.mxu0 %v5249_v25  ;;  %v5305_v23 = vpack.c.bf16 %v3803_v22, %v3802_v21 }
 0x38f   :  { %v1141_v16 = vld [vmem:[#allocation2 + $0x28] sm:$0xff]  ;;  %5252 = vmatpush3.bf16.msra.mxu0 %v5249_v25 }
 0x390   :  { %v968_v59 = vld [vmem:[#allocation2 + $0x1f] sm:$0xff]  ;;  %5254 = vmatprep.subr.bf16.mxu0 %v5253_v28 }
 0x391   :  { %4553 = vmatmul.mubr.msk.f32.vlgmr.msra.gmra.mrb[2].mxu1 %vm35_vm0, %v968_v59  ;;  %v1140_v11 = vld [vmem:[#allocation2 + $0x20] sm:$0xff]  ;;  %v3791_v59 = vld [vmem:[%s6807_s1 + $0x388] sm:$0xff] }
 0x392   :  { %5212 = vmatpush3.bf16.msra.mxu1 %v5209_v42  ;;  %4571 = vmatprep.mubr.msk.f32.mxu1 %vm35_vm0, %v6047_v58 }
 0x393   :  { %5214 = vmatprep.subr.bf16.mxu1 %v5213_v57  ;;  %5256 = vmatpush3.bf16.msra.mxu0 %v5253_v28 }
 0x394   :  { %5258 = vmatprep.subr.bf16.mxu0 %v5257_v31 }
 0x396   :  { %5216 = vmatpush3.bf16.msra.mxu1 %v5213_v57  ;;  %v3790_v57 = vld [vmem:[%s6807_s1 + $0x380] sm:$0xff] }
 0x397   :  { %5218 = vmatprep.subr.bf16.mxu1 %v5217_v62  ;;  %v5273_v60 = vpack.c.bf16 %v3791_v59, %v3790_v57  ;;  %v3827_v57 = vld [vmem:[%s6807_s1 + $0x468] sm:$0xff] }
 0x39a   :  { %5220 = vmatpush3.bf16.msra.mxu1 %v5217_v62  ;;  %v3793_v62 = vld [vmem:[%s6807_s1 + $0x398] sm:$0xff] }
 0x39b   :  { %5222 = vmatprep.subr.bf16.mxu1 %v5221_v1  ;;  %v5277_v63 = vpack.c.bf16 %v3793_v62, %v3792_v61  ;;  %v3828_v61 = vld [vmem:[%s6807_s1 + $0x470] sm:$0xff]  ;;  %v3829_v62 = vld [vmem:[%s6807_s1 + $0x478] sm:$0xff] }
 0x39e   :  { %5224 = vmatpush3.bf16.msra.mxu1 %v5221_v1  ;;  %v3794_v1 = vld [vmem:[%s6807_s1 + $0x3a0] sm:$0xff] }
 0x39f   :  { %5226 = vmatprep.subr.bf16.mxu1 %v5225_v4 }
 0x3a1   :  { %4572 = vmatmul.mubr.msk.f32.vlgmr.msra.gmra.mrb[2].mxu1 %vm35_vm0, %v6076_v7 }
 0x3a2   :  { %5228 = vmatpush3.bf16.msra.mxu1 %v5225_v4  ;;  %4590 = vmatprep.mubr.msk.f32.mxu1 %vm35_vm0, %v1140_v11  ;;  %v5281_v4 = vpack.c.bf16 %v3795_v2, %v3794_v1  ;;  %v3842_v1 = vld [vmem:[%s6807_s1 + $0x4c0] sm:$0xff]  ;;  %v3843_v2 = vld [vmem:[%s6807_s1 + $0x4c8] sm:$0xff] }
 0x3a3   :  { %5230 = vmatprep.subr.bf16.mxu1 %v5229_v8 }
 0x3a6   :  { %5232 = vmatpush3.bf16.msra.mxu1 %v5229_v8  ;;  %v5285_v8 = vpack.c.bf16 %v3797_v6, %v3796_v5  ;;  %v3845_v5 = vld [vmem:[%s6807_s1 + $0x4d8] sm:$0xff] }
 0x3a7   :  { %5234 = vmatprep.subr.bf16.mxu1 %v5233_v12 }
 0x3aa   :  { %5236 = vmatpush3.bf16.msra.mxu1 %v5233_v12 }
 0x3ab   :  { %5238 = vmatprep.subr.bf16.mxu1 %v5237_v15 }
 0x3ae   :  { %5240 = vmatpush3.bf16.msra.mxu1 %v5237_v15  ;;  %v3814_v15 = vld [vmem:[%s6807_s1 + $0x420] sm:$0xff] }
 0x3b1   :  { %4591 = vmatmul.mubr.msk.f32.vlgmr.msra.gmra.mrb[2].mxu1 %vm35_vm0, %v1141_v16 }
 0x484   :  { %v4592_v33 = vpop.f32.mrb[2].mxu1 }
 0x485   :  { %v1240_v35 = vmul.f32 %v4592_v33, %v3768_v32  ;;  %v1223_v36 = vpop.f32.mrb[3].mxu1 }
 0x486   :  { %v1239_v37 = vmul.f32 %v3768_v32, %v1223_v36  ;;  %v3804_v36 = vld [vmem:[%s6807_s1 + $0x3d0] sm:$0xff] }
 0x487   :  { %v1247_v39 = vadd.f32 %v3769_v34, %v1240_v35 }
 0x488   :  { %v1246_v40 = vadd.f32 %v3769_v34, %v1239_v37  ;;  %v3805_v37 = vld [vmem:[%s6807_s1 + $0x3d8] sm:$0xff] }
 0x489   :  { %v1249_v41 = vmax.f32 %v1247_v39, 0.0 }
 0x48a   :  { %v1248_v42 = vmax.f32 %v1246_v40, 0.0 }
 0x48b   :  { %v1251_v43 = vadd.f32 %v1249_v41, %v1141_v16  ;;  %v3815_v16 = vld [vmem:[%s6807_s1 + $0x428] sm:$0xff]  ;;  %v5309_v41 = vpack.c.bf16 %v3805_v37, %v3804_v36  ;;  %v3841_v36 = vld [vmem:[%s6807_s1 + $0x4b8] sm:$0xff] }
 0x48c   :  { %v1250_v44 = vadd.f32 %v1248_v42, %v1140_v11  ;;  %v3811_v11 = vld [vmem:[%s6807_s1 + $0x408] sm:$0xff]  ;;  %v5297_v17 = vpack.c.bf16 %v3815_v16, %v3814_v15  ;;  %v3806_v42 = vld [vmem:[%s6807_s1 + $0x3e0] sm:$0xff] }
 0x48d   :  { %1253 = vst.msk [vmem:[#allocation2 + $0x28] sm:$0xff] %vm35_vm0, %v1251_v43  ;;  %v5289_v12 = vpack.c.bf16 %v3811_v11, %v3810_v10  ;;  %v3807_v43 = vld [vmem:[%s6807_s1 + $0x3e8] sm:$0xff]  ;;  %v3848_v11 = vld [vmem:[%s6807_s1 + $0x4f0] sm:$0xff]  ;;  %v3832_v16 = vld [vmem:[%s6808_s2 + $0x5] ss:$0 sm:$0xff] }
 0x48e   :  { %1252 = vst.msk [vmem:[#allocation2 + $0x20] sm:$0xff] %vm35_vm0, %v1250_v44  ;;  %v5313_v45 = vpack.c.bf16 %v3807_v43, %v3806_v42  ;;  %v3857_v42 = vld [vmem:[%s6807_s1 + $0x518] sm:$0xff] }
 0x48f   :  { %5290 = vmatprep.subr.bf16.mxu1 %v5289_v12 }
 0x490   :  { %5292 = vmatpush3.bf16.msra.mxu1 %v5289_v12  ;;  %v3849_v12 = vld [vmem:[%s6807_s1 + $0x4f8] sm:$0xff] }
 0x494   :  { %v1439_v9 = vld [vmem:[#allocation2 + $0x28] sm:$0xff] }
 0x495   :  { %v1265_v47 = vld [vmem:[#allocation2 + $0x1f] sm:$0xff]  ;;  %v1266_v48 = vld [vmem:[#allocation2 + $0x27] sm:$0xff] }
 0x496   :  { %4609 = vmatprep.mubr.msk.f32.mxu0 %vm35_vm0, %v1265_v47  ;;  %v1254_v52 = vld [vmem:[#allocation2 + $0x1e] sm:$0xff]  ;;  %v1255_v0 = vld [vmem:[#allocation2 + $0x26] sm:$0xff] }
 0x497   :  { %4610 = vmatmul.mubr.msk.f32.vlgmr.msra.gmra.mrb[4].mxu0 %vm35_vm0, %v1266_v48  ;;  %v1438_v3 = vld [vmem:[#allocation2 + $0x20] sm:$0xff]  ;;  %v3809_v47 = vld [vmem:[%s6807_s1 + $0x3f8] sm:$0xff] }
 0x498   :  { %5260 = vmatpush3.bf16.msra.mxu0 %v5257_v31  ;;  %4628 = vmatprep.mubr.msk.f32.mxu0 %vm35_vm0, %v1254_v52  ;;  %v5317_v48 = vpack.c.bf16 %v3809_v47, %v3808_v46  ;;  %v3824_v52 = vld [vmem:[%s6807_s1 + $0x450] sm:$0xff] }
 0x499   :  { %5262 = vmatprep.subr.bf16.mxu0 %v5261_v49 }
 0x49c   :  { %5264 = vmatpush3.bf16.msra.mxu0 %v5261_v49  ;;  %v3822_v49 = vld [vmem:[%s6807_s1 + $0x440] sm:$0xff] }
 0x49d   :  { %5266 = vmatprep.subr.bf16.mxu0 %v5265_v53  ;;  %v5321_v51 = vpack.c.bf16 %v3823_v50, %v3822_v49  ;;  %v3861_v49 = vld [vmem:[%s6807_s1 + $0x538] sm:$0xff] }
 0x4a0   :  { %5268 = vmatpush3.bf16.msra.mxu0 %v5265_v53  ;;  %v3825_v53 = vld [vmem:[%s6807_s1 + $0x458] sm:$0xff] }
 0x4a1   :  { %5270 = vmatprep.subr.bf16.mxu0 %v5269_v56  ;;  %v5325_v54 = vpack.c.bf16 %v3825_v53, %v3824_v52  ;;  %v3875_v52 = vld [vmem:[%s6807_s1 + $0x588] sm:$0xff] }
 0x4a4   :  { %5272 = vmatpush3.bf16.msra.mxu0 %v5269_v56  ;;  %v3826_v56 = vld [vmem:[%s6807_s1 + $0x460] sm:$0xff] }
 0x4a5   :  { %5274 = vmatprep.subr.bf16.mxu0 %v5273_v60 }
 0x4a7   :  { %4629 = vmatmul.mubr.msk.f32.vlgmr.msra.gmra.mrb[4].mxu0 %vm35_vm0, %v1255_v0 }
 0x4a8   :  { %5276 = vmatpush3.bf16.msra.mxu0 %v5273_v60  ;;  %4647 = vmatprep.mubr.msk.f32.mxu0 %vm35_vm0, %v1438_v3  ;;  %v5329_v60 = vpack.c.bf16 %v3827_v57, %v3826_v56  ;;  %v3878_v57 = vld [vmem:[%s6807_s1 + $0x5a0] sm:$0xff] }
 0x4a9   :  { %5278 = vmatprep.subr.bf16.mxu0 %v5277_v63 }
 0x4ac   :  { %5280 = vmatpush3.bf16.msra.mxu0 %v5277_v63  ;;  %v5333_v63 = vpack.c.bf16 %v3829_v62, %v3828_v61  ;;  %v3880_v61 = vld [vmem:[%s6807_s1 + $0x5b0] sm:$0xff]  ;;  %v3881_v62 = vld [vmem:[%s6807_s1 + $0x5b8] sm:$0xff] }
 0x4ad   :  { %5282 = vmatprep.subr.bf16.mxu0 %v5281_v4 }
 0x4b0   :  { %5284 = vmatpush3.bf16.msra.mxu0 %v5281_v4  ;;  %v3844_v4 = vld [vmem:[%s6807_s1 + $0x4d0] sm:$0xff] }
 0x4b1   :  { %5286 = vmatprep.subr.bf16.mxu0 %v5285_v8  ;;  %v5341_v6 = vpack.c.bf16 %v3845_v5, %v3844_v4  ;;  %v3865_v5 = vld [vmem:[%s6809_s3 + $0x6] ss:$0 sm:$0xff] }
 0x4b4   :  { %5288 = vmatpush3.bf16.msra.mxu0 %v5285_v8  ;;  %v3846_v8 = vld [vmem:[%s6807_s1 + $0x4e0] sm:$0xff] }
 0x4b7   :  { %4648 = vmatmul.mubr.msk.f32.vlgmr.msra.gmra.mrb[4].mxu0 %vm35_vm0, %v1439_v9 }
 0x4b8   :  { %4723 = vmatprep.mubr.msk.f32.mxu0 %vm35_vm0, %v6023_v38  ;;  %v5293_v38 = vpack.c.bf16 %v3813_v14, %v3812_v13  ;;  %v3834_v13 = vld [vmem:[%s6807_s1 + $0x480] sm:$0xff]  ;;  %v5349_v14 = vpack.c.bf16 %v3849_v12, %v3848_v11 }
 0x4ba   :  { %5294 = vmatprep.subr.bf16.mxu1 %v5293_v38 }
 0x4bb   :  { %5296 = vmatpush3.bf16.msra.mxu1 %v5293_v38  ;;  %v3835_v38 = vld [vmem:[%s6807_s1 + $0x488] sm:$0xff] }
 0x4bc   :  { %5298 = vmatprep.subr.bf16.mxu1 %v5297_v17  ;;  %v5353_v15 = vpack.c.bf16 %v3835_v38, %v3834_v13 }
 0x4bf   :  { %5300 = vmatpush3.bf16.msra.mxu1 %v5297_v17 }
 0x4c0   :  { %5302 = vmatprep.subr.bf16.mxu1 %v5301_v20 }
 0x4c3   :  { %5304 = vmatpush3.bf16.msra.mxu1 %v5301_v20 }
 0x4c4   :  { %5306 = vmatprep.subr.bf16.mxu1 %v5305_v23 }
 0x58a   :  { %v4649_v25 = vpop.f32.mrb[4].mxu0 }
 0x58b   :  { %v1538_v27 = vmul.f32 %v4649_v25, %v3800_v24  ;;  %v1521_v28 = vpop.f32.mrb[5].mxu0 }
 0x58c   :  { %v1537_v29 = vmul.f32 %v3800_v24, %v1521_v28  ;;  %v3836_v28 = vld [vmem:[%s6807_s1 + $0x490] sm:$0xff] }
 0x58d   :  { %v1545_v30 = vadd.f32 %v3801_v26, %v1538_v27 }
 0x58e   :  { %v1544_v31 = vadd.f32 %v3801_v26, %v1537_v29  ;;  %v3837_v29 = vld [vmem:[%s6807_s1 + $0x498] sm:$0xff] }
 0x58f   :  { %v1547_v32 = vmax.f32 %v1545_v30, 0.0  ;;  %v5357_v30 = vpack.c.bf16 %v3837_v29, %v3836_v28  ;;  %v3887_v28 = vld [vmem:[%s6807_s1 + $0x5c8] sm:$0xff] }
 0x590   :  { %v1546_v33 = vmax.f32 %v1544_v31, 0.0 }
 0x591   :  { %v1549_v34 = vadd.f32 %v1547_v32, %v1439_v9  ;;  %v3847_v9 = vld [vmem:[%s6807_s1 + $0x4e8] sm:$0xff]  ;;  %v3838_v32 = vld [vmem:[%s6807_s1 + $0x4a0] sm:$0xff] }
 0x592   :  { %v1548_v35 = vadd.f32 %v1546_v33, %v1438_v3  ;;  %v5337_v3 = vpack.c.bf16 %v3843_v2, %v3842_v1  ;;  %v5345_v10 = vpack.c.bf16 %v3847_v9, %v3846_v8  ;;  %v3839_v33 = vld [vmem:[%s6807_s1 + $0x4a8] sm:$0xff] }
 0x593   :  { %1551 = vst.msk [vmem:[#allocation2 + $0x28] sm:$0xff] %vm35_vm0, %v1549_v34  ;;  %v5361_v34 = vpack.c.bf16 %v3839_v33, %v3838_v32  ;;  %v3867_v1 = vld [vmem:[%s6807_s1 + $0x548] sm:$0xff] }
 0x594   :  { %1550 = vst.msk [vmem:[#allocation2 + $0x20] sm:$0xff] %vm35_vm0, %v1548_v35  ;;  %5338 = vmatprep.subr.bf16.mxu0 %v5337_v3  ;;  %v3840_v35 = vld [vmem:[%s6807_s1 + $0x4b0] sm:$0xff] }
 0x595   :  { %5340 = vmatpush3.bf16.msra.mxu0 %v5337_v3  ;;  %v5365_v37 = vpack.c.bf16 %v3841_v36, %v3840_v35  ;;  %v3864_v3 = vld [vmem:[%s6808_s2 + $0x6] ss:$0 sm:$0xff]  ;;  %v3891_v35 = vld [vmem:[%s6807_s1 + $0x5e8] sm:$0xff] }
 0x596   :  { %5342 = vmatprep.subr.bf16.mxu0 %v5341_v6 }
 0x599   :  { %5344 = vmatpush3.bf16.msra.mxu0 %v5341_v6 }
 0x59a   :  { %v1737_v0 = vld [vmem:[#allocation2 + $0x28] sm:$0xff]  ;;  %5346 = vmatprep.subr.bf16.mxu0 %v5345_v10 }
 0x59b   :  { %v1563_v39 = vld [vmem:[#allocation2 + $0x1d] sm:$0xff]  ;;  %v1564_v40 = vld [vmem:[#allocation2 + $0x25] sm:$0xff] }
 0x59c   :  { %4666 = vmatprep.mubr.msk.f32.mxu1 %vm35_vm0, %v1563_v39  ;;  %v1552_v44 = vld [vmem:[#allocation2 + $0x1a] sm:$0xff]  ;;  %v1553_v55 = vld [vmem:[#allocation2 + $0x22] sm:$0xff] }
 0x59d   :  { %4667 = vmatmul.mubr.msk.f32.vlgmr.msra.gmra.mrb[4].mxu1 %vm35_vm0, %v1564_v40  ;;  %v1736_v59 = vld [vmem:[#allocation2 + $0x20] sm:$0xff]  ;;  %5348 = vmatpush3.bf16.msra.mxu0 %v5345_v10 }
 0x59e   :  { %5308 = vmatpush3.bf16.msra.mxu1 %v5305_v23  ;;  %4685 = vmatprep.mubr.msk.f32.mxu1 %vm35_vm0, %v1552_v44  ;;  %v3854_v39 = vld [vmem:[%s6807_s1 + $0x500] sm:$0xff] }
 0x59f   :  { %5310 = vmatprep.subr.bf16.mxu1 %v5309_v41  ;;  %5350 = vmatprep.subr.bf16.mxu0 %v5349_v14  ;;  %v3858_v44 = vld [vmem:[%s6807_s1 + $0x520] sm:$0xff] }
 0x5a1   :  { %5352 = vmatpush3.bf16.msra.mxu0 %v5349_v14 }
 0x5a2   :  { %5312 = vmatpush3.bf16.msra.mxu1 %v5309_v41  ;;  %5354 = vmatprep.subr.bf16.mxu0 %v5353_v15  ;;  %v3856_v41 = vld [vmem:[%s6807_s1 + $0x510] sm:$0xff] }
 0x5a3   :  { %5314 = vmatprep.subr.bf16.mxu1 %v5313_v45  ;;  %v5373_v43 = vpack.c.bf16 %v3857_v42, %v3856_v41  ;;  %v3906_v42 = vld [vmem:[%s6807_s1 + $0x640] sm:$0xff] }
 0x5a6   :  { %5316 = vmatpush3.bf16.msra.mxu1 %v5313_v45  ;;  %v3859_v45 = vld [vmem:[%s6807_s1 + $0x528] sm:$0xff] }
 0x5a7   :  { %5318 = vmatprep.subr.bf16.mxu1 %v5317_v48  ;;  %v5377_v47 = vpack.c.bf16 %v3859_v45, %v3858_v44  ;;  %v3908_v45 = vld [vmem:[%s6807_s1 + $0x650] sm:$0xff] }
 0x5aa   :  { %5320 = vmatpush3.bf16.msra.mxu1 %v5317_v48  ;;  %v3860_v48 = vld [vmem:[%s6807_s1 + $0x530] sm:$0xff] }
 0x5ab   :  { %5322 = vmatprep.subr.bf16.mxu1 %v5321_v51  ;;  %v5381_v50 = vpack.c.bf16 %v3861_v49, %v3860_v48  ;;  %v3910_v48 = vld [vmem:[%s6807_s1 + $0x660] sm:$0xff]  ;;  %v3911_v49 = vld [vmem:[%s6807_s1 + $0x668] sm:$0xff] }
 0x5ad   :  { %4686 = vmatmul.mubr.msk.f32.vlgmr.msra.gmra.mrb[4].mxu1 %vm35_vm0, %v1553_v55  ;;  %v3877_v55 = vld [vmem:[%s6807_s1 + $0x598] sm:$0xff] }
 0x5ae   :  { %5324 = vmatpush3.bf16.msra.mxu1 %v5321_v51  ;;  %4704 = vmatprep.mubr.msk.f32.mxu1 %vm35_vm0, %v1736_v59  ;;  %v3874_v51 = vld [vmem:[%s6807_s1 + $0x580] sm:$0xff] }
 0x5af   :  { %5326 = vmatprep.subr.bf16.mxu1 %v5325_v54  ;;  %v5385_v53 = vpack.c.bf16 %v3875_v52, %v3874_v51  ;;  %v3913_v51 = vld [vmem:[%s6807_s1 + $0x678] sm:$0xff] }
 0x5b2   :  { %5328 = vmatpush3.bf16.msra.mxu1 %v5325_v54  ;;  %v3876_v54 = vld [vmem:[%s6807_s1 + $0x590] sm:$0xff] }
 0x5b3   :  { %5330 = vmatprep.subr.bf16.mxu1 %v5329_v60  ;;  %v5389_v56 = vpack.c.bf16 %v3877_v55, %v3876_v54  ;;  %v3899_v54 = vld [vmem:[%s6807_s1 + $0x608] sm:$0xff] }
 0x5b6   :  { %5332 = vmatpush3.bf16.msra.mxu1 %v5329_v60 }
 0x5b7   :  { %5334 = vmatprep.subr.bf16.mxu1 %v5333_v63 }
 0x5ba   :  { %5336 = vmatpush3.bf16.msra.mxu1 %v5333_v63  ;;  %v5397_v63 = vpack.c.bf16 %v3881_v62, %v3880_v61 }
 0x5bb   :  { %5386 = vmatprep.subr.bf16.mxu1 %v5385_v53 }
 0x5bd   :  { %4705 = vmatmul.mubr.msk.f32.vlgmr.msra.gmra.mrb[4].mxu1 %vm35_vm0, %v1737_v0 }
 0x5be   :  { %5388 = vmatpush3.bf16.msra.mxu1 %v5385_v53  ;;  %v3898_v53 = vld [vmem:[%s6807_s1 + $0x600] sm:$0xff] }
 0x5bf   :  { %5390 = vmatprep.subr.bf16.mxu1 %v5389_v56  ;;  %v5449_v55 = vpack.c.bf16 %v3899_v54, %v3898_v53 }
 0x5c2   :  { %5392 = vmatpush3.bf16.msra.mxu1 %v5389_v56  ;;  %v3896_v56 = vld [vmem:[%s6808_s2 + $0x7] ss:$0 sm:$0xff] }
 0x690   :  { %v4706_v17 = vpop.f32.mrb[4].mxu1 }
 0x691   :  { %v1836_v19 = vmul.f32 %v4706_v17, %v3832_v16  ;;  %v1819_v20 = vpop.f32.mrb[5].mxu1 }
 0x692   :  { %v1835_v21 = vmul.f32 %v3832_v16, %v1819_v20  ;;  %v3869_v16 = vld [vmem:[%s6807_s1 + $0x558] sm:$0xff]  ;;  %v3870_v20 = vld [vmem:[%s6807_s1 + $0x560] sm:$0xff] }
 0x693   :  { %v1843_v22 = vadd.f32 %v3833_v18, %v1836_v19 }
 0x694   :  { %v1842_v23 = vadd.f32 %v3833_v18, %v1835_v21  ;;  %v3871_v21 = vld [vmem:[%s6807_s1 + $0x568] sm:$0xff] }
 0x695   :  { %v1845_v24 = vmax.f32 %v1843_v22, 0.0 }
 0x696   :  { %v1844_v25 = vmax.f32 %v1842_v23, 0.0  ;;  %v5409_v23 = vpack.c.bf16 %v3871_v21, %v3870_v20  ;;  %v3920_v20 = vld [vmem:[%s6807_s1 + $0x690] sm:$0xff]  ;;  %v3921_v21 = vld [vmem:[%s6807_s1 + $0x698] sm:$0xff] }
 0x697   :  { %v1847_v26 = vadd.f32 %v1845_v24, %v1737_v0  ;;  %v3866_v0 = vld [vmem:[%s6807_s1 + $0x540] sm:$0xff]  ;;  %v3872_v24 = vld [vmem:[%s6807_s1 + $0x570] sm:$0xff] }
 0x698   :  { %v1846_v27 = vadd.f32 %v1844_v25, %v1736_v59  ;;  %v3879_v59 = vld [vmem:[%s6807_s1 + $0x5a8] sm:$0xff]  ;;  %v5401_v2 = vpack.c.bf16 %v3867_v1, %v3866_v0  ;;  %v3873_v25 = vld [vmem:[%s6807_s1 + $0x578] sm:$0xff] }
 0x699   :  { %1849 = vst.msk [vmem:[#allocation2 + $0x28] sm:$0xff] %vm35_vm0, %v1847_v26  ;;  %v5393_v60 = vpack.c.bf16 %v3879_v59, %v3878_v57  ;;  %v5413_v26 = vpack.c.bf16 %v3873_v25, %v3872_v24  ;;  %v3897_v59 = vld [vmem:[%s6809_s3 + $0x7] ss:$0 sm:$0xff]  ;;  %v3923_v25 = vld [vmem:[%s6807_s1 + $0x6a8] sm:$0xff] }
 0x69a   :  { %1848 = vst.msk [vmem:[#allocation2 + $0x20] sm:$0xff] %vm35_vm0, %v1846_v27  ;;  %v3886_v27 = vld [vmem:[%s6807_s1 + $0x5c0] sm:$0xff] }
 0x69b   :  { %5394 = vmatprep.subr.bf16.mxu1 %v5393_v60  ;;  %v5417_v29 = vpack.c.bf16 %v3887_v28, %v3886_v27  ;;  %v3922_v24 = vld [vmem:[%s6807_s1 + $0x6a0] sm:$0xff]  ;;  %v3924_v28 = vld [vmem:[%s6807_s1 + $0x6b0] sm:$0xff] }
 0x69c   :  { %5396 = vmatpush3.bf16.msra.mxu1 %v5393_v60  ;;  %v5473_v27 = vpack.c.bf16 %v3923_v25, %v3922_v24  ;;  %v3972_v25 = vld [vmem:[%s6807_s1 + $0x7d0] sm:$0xff] }
 0x69d   :  { %5398 = vmatprep.subr.bf16.mxu1 %v5397_v63 }
 0x6a0   :  { %5400 = vmatpush3.bf16.msra.mxu1 %v5397_v63 }
 0x6a1   :  { %v1862_v31 = vld [vmem:[#allocation2 + $0x1f] sm:$0xff]  ;;  %5402 = vmatprep.subr.bf16.mxu1 %v5401_v2 }
 0x6a2   :  { %4724 = vmatmul.mubr.msk.f32.vlgmr.msra.gmra.mrb[6].mxu0 %vm35_vm0, %v1862_v31  ;;  %v2034_v46 = vld [vmem:[#allocation2 + $0x20] sm:$0xff]  ;;  %v3889_v31 = vld [vmem:[%s6807_s1 + $0x5d8] sm:$0xff] }
 0x6a3   :  { %5356 = vmatpush3.bf16.msra.mxu0 %v5353_v15  ;;  %4742 = vmatprep.mubr.msk.f32.mxu0 %vm35_vm0, %v6047_v58  ;;  %v3855_v58 = vld [vmem:[%s6807_s1 + $0x508] sm:$0xff]  ;;  %v3868_v15 = vld [vmem:[%s6807_s1 + $0x550] sm:$0xff] }
 0x6a4   :  { %5358 = vmatprep.subr.bf16.mxu0 %v5357_v30  ;;  %v5369_v40 = vpack.c.bf16 %v3855_v58, %v3854_v39  ;;  %v5405_v19 = vpack.c.bf16 %v3869_v16, %v3868_v15  ;;  %v3892_v39 = vld [vmem:[%s6807_s1 + $0x5f0] sm:$0xff]  ;;  %v3893_v58 = vld [vmem:[%s6807_s1 + $0x5f8] sm:$0xff] }
 0x6a5   :  { %v3905_v15 = vld [vmem:[%s6807_s1 + $0x638] sm:$0xff] }
 0x6a7   :  { %5360 = vmatpush3.bf16.msra.mxu0 %v5357_v30  ;;  %v3888_v30 = vld [vmem:[%s6807_s1 + $0x5d0] sm:$0xff] }
 0x6a8   :  { %5362 = vmatprep.subr.bf16.mxu0 %v5361_v34  ;;  %v5421_v32 = vpack.c.bf16 %v3889_v31, %v3888_v30 }
 0x6ab   :  { %5364 = vmatpush3.bf16.msra.mxu0 %v5361_v34  ;;  %v3890_v34 = vld [vmem:[%s6807_s1 + $0x5e0] sm:$0xff] }
 0x6ac   :  { %5366 = vmatprep.subr.bf16.mxu0 %v5365_v37 }
 0x6af   :  { %5368 = vmatpush3.bf16.msra.mxu0 %v5365_v37  ;;  %v5425_v37 = vpack.c.bf16 %v3891_v35, %v3890_v34  ;;  %v3940_v35 = vld [vmem:[%s6807_s1 + $0x710] sm:$0xff] }
 0x6b0   :  { %5370 = vmatprep.subr.bf16.mxu0 %v5369_v40 }
 0x6b2   :  { %4743 = vmatmul.mubr.msk.f32.vlgmr.msra.gmra.mrb[6].mxu0 %vm35_vm0, %v6076_v7  ;;  %v2035_v7 = vld [vmem:[#allocation2 + $0x28] sm:$0xff] }
 0x6b3   :  { %5372 = vmatpush3.bf16.msra.mxu0 %v5369_v40  ;;  %4761 = vmatprep.mubr.msk.f32.mxu0 %vm35_vm0, %v2034_v46  ;;  %v5429_v40 = vpack.c.bf16 %v3893_v58, %v3892_v39  ;;  %v3942_v39 = vld [vmem:[%s6807_s1 + $0x720] sm:$0xff]  ;;  %v3943_v58 = vld [vmem:[%s6807_s1 + $0x728] sm:$0xff] }
 0x6b4   :  { %5374 = vmatprep.subr.bf16.mxu0 %v5373_v43 }
 0x6b7   :  { %5376 = vmatpush3.bf16.msra.mxu0 %v5373_v43  ;;  %v3907_v43 = vld [vmem:[%s6807_s1 + $0x648] sm:$0xff] }
 0x6b8   :  { %5378 = vmatprep.subr.bf16.mxu0 %v5377_v47  ;;  %v5433_v44 = vpack.c.bf16 %v3907_v43, %v3906_v42  ;;  %v3945_v42 = vld [vmem:[%s6807_s1 + $0x738] sm:$0xff] }
 0x6b9   :  { %v2755_v43 = vld [vmem:[#allocation2 + $0x17] sm:$0xff] }
 0x6bb   :  { %5380 = vmatpush3.bf16.msra.mxu0 %v5377_v47 }
 0x6bc   :  { %5382 = vmatprep.subr.bf16.mxu0 %v5381_v50 }
 0x6bf   :  { %5384 = vmatpush3.bf16.msra.mxu0 %v5381_v50  ;;  %v5441_v50 = vpack.c.bf16 %v3911_v49, %v3910_v48  ;;  %v3928_v48 = vld [vmem:[%s6808_s2 + $0x8] ss:$0 sm:$0xff] }
 0x6c0   :  { %5434 = vmatprep.subr.bf16.mxu0 %v5433_v44 }
 0x6c2   :  { %4762 = vmatmul.mubr.msk.f32.vlgmr.msra.gmra.mrb[6].mxu0 %vm35_vm0, %v2035_v7 }
 0x6c3   :  { %5436 = vmatpush3.bf16.msra.mxu0 %v5433_v44 }
 0x795   :  { %v4763_v4 = vpop.f32.mrb[6].mxu0 }
 0x796   :  { %v2134_v6 = vmul.f32 %v4763_v4, %v3864_v3  ;;  %v2117_v8 = vpop.f32.mrb[7].mxu0 }
 0x797   :  { %v2133_v9 = vmul.f32 %v3864_v3, %v2117_v8 }
 0x798   :  { %v2141_v10 = vadd.f32 %v3865_v5, %v2134_v6  ;;  %v3901_v6 = vld [vmem:[%s6807_s1 + $0x618] sm:$0xff] }
 0x799   :  { %v2140_v11 = vadd.f32 %v3865_v5, %v2133_v9  ;;  %v3900_v5 = vld [vmem:[%s6807_s1 + $0x610] sm:$0xff] }
 0x79a   :  { %v2143_v12 = vmax.f32 %v2141_v10, 0.0  ;;  %v5453_v10 = vpack.c.bf16 %v3901_v6, %v3900_v5  ;;  %v3937_v5 = vld [vmem:[%s6807_s1 + $0x6f8] sm:$0xff] }
 0x79b   :  { %v2142_v13 = vmax.f32 %v2140_v11, 0.0  ;;  %v3902_v11 = vld [vmem:[%s6807_s1 + $0x620] sm:$0xff] }
 0x79c   :  { %v2145_v14 = vadd.f32 %v2143_v12, %v2035_v7  ;;  %v3912_v7 = vld [vmem:[%s6807_s1 + $0x670] sm:$0xff]  ;;  %v3903_v12 = vld [vmem:[%s6807_s1 + $0x628] sm:$0xff] }
 0x79d   :  { %v2144_v38 = vadd.f32 %v2142_v13, %v2034_v46  ;;  %v3909_v46 = vld [vmem:[%s6807_s1 + $0x658] sm:$0xff]  ;;  %v5445_v52 = vpack.c.bf16 %v3913_v51, %v3912_v7 }
 0x79e   :  { %2147 = vst.msk [vmem:[#allocation2 + $0x28] sm:$0xff] %vm35_vm0, %v2145_v14  ;;  %v5437_v47 = vpack.c.bf16 %v3909_v46, %v3908_v45  ;;  %v5457_v14 = vpack.c.bf16 %v3903_v12, %v3902_v11  ;;  %v3930_v45 = vld [vmem:[%s6807_s1 + $0x6c0] sm:$0xff]  ;;  %v3931_v46 = vld [vmem:[%s6807_s1 + $0x6c8] sm:$0xff]  ;;  %v3952_v11 = vld [vmem:[%s6807_s1 + $0x750] sm:$0xff] }
 0x79f   :  { %2146 = vst.msk [vmem:[#allocation2 + $0x20] sm:$0xff] %vm35_vm0, %v2144_v38  ;;  %v3904_v38 = vld [vmem:[%s6807_s1 + $0x630] sm:$0xff]  ;;  %v3953_v12 = vld [vmem:[%s6807_s1 + $0x758] sm:$0xff] }
 0x7a0   :  { %5438 = vmatprep.subr.bf16.mxu0 %v5437_v47  ;;  %v5461_v16 = vpack.c.bf16 %v3905_v15, %v3904_v38  ;;  %v3954_v38 = vld [vmem:[%s6807_s1 + $0x760] sm:$0xff]  ;;  %v3955_v15 = vld [vmem:[%s6807_s1 + $0x768] sm:$0xff] }
 0x7a1   :  { %5440 = vmatpush3.bf16.msra.mxu0 %v5437_v47  ;;  %v5497_v47 = vpack.c.bf16 %v3931_v46, %v3930_v45 }
 0x7a2   :  { %5442 = vmatprep.subr.bf16.mxu0 %v5441_v50 }
 0x7a5   :  { %v2333_v41 = vld [vmem:[#allocation2 + $0x28] sm:$0xff]  ;;  %5444 = vmatpush3.bf16.msra.mxu0 %v5441_v50 }
 0x7a6   :  { %v2159_v17 = vld [vmem:[#allocation2 + $0x1f] sm:$0xff]  ;;  %v2160_v18 = vld [vmem:[#allocation2 + $0x27] sm:$0xff]  ;;  %5446 = vmatprep.subr.bf16.mxu0 %v5445_v52 }
 0x7a7   :  { %4780 = vmatprep.mubr.msk.f32.mxu1 %vm35_vm0, %v2159_v17  ;;  %v2148_v22 = vld [vmem:[#allocation2 + $0x1e] sm:$0xff]  ;;  %v2149_v33 = vld [vmem:[#allocation2 + $0x26] sm:$0xff] }
 0x7a8   :  { %4781 = vmatmul.mubr.msk.f32.vlgmr.msra.gmra.mrb[6].mxu1 %vm35_vm0, %v2160_v18  ;;  %v2332_v36 = vld [vmem:[#allocation2 + $0x20] sm:$0xff]  ;;  %v3919_v18 = vld [vmem:[%s6807_s1 + $0x688] sm:$0xff] }
 0x7a9   :  { %5404 = vmatpush3.bf16.msra.mxu1 %v5401_v2  ;;  %4799 = vmatprep.mubr.msk.f32.mxu1 %vm35_vm0, %v2148_v22  ;;  %v3918_v17 = vld [vmem:[%s6807_s1 + $0x680] sm:$0xff]  ;;  %v5469_v22 = vpack.c.bf16 %v3921_v21, %v3920_v20  ;;  %v3929_v50 = vld [vmem:[%s6809_s3 + $0x8] ss:$0 sm:$0xff] }
 0x7aa   :  { %5406 = vmatprep.subr.bf16.mxu1 %v5405_v19  ;;  %5448 = vmatpush3.bf16.msra.mxu0 %v5445_v52 }
 0x7ab   :  { %5450 = vmatprep.subr.bf16.mxu0 %v5449_v55 }
 0x7ad   :  { %5408 = vmatpush3.bf16.msra.mxu1 %v5405_v19  ;;  %v5465_v19 = vpack.c.bf16 %v3919_v18, %v3918_v17  ;;  %v5521_v17 = vpack.c.bf16 %v3955_v15, %v3954_v38  ;;  %v3956_v18 = vld [vmem:[%s6807_s1 + $0x770] sm:$0xff] }
 0x7ae   :  { %5410 = vmatprep.subr.bf16.mxu1 %v5409_v23  ;;  %v3340_v15 = vld [vmem:[%s6810_s4 + $0x10] sm:$0xff] }
 0x7b1   :  { %5412 = vmatpush3.bf16.msra.mxu1 %v5409_v23 }
 0x7b2   :  { %5414 = vmatprep.subr.bf16.mxu1 %v5413_v26 }
 0x7b5   :  { %5416 = vmatpush3.bf16.msra.mxu1 %v5413_v26 }
 0x7b6   :  { %5418 = vmatprep.subr.bf16.mxu1 %v5417_v29 }
 0x7b8   :  { %4800 = vmatmul.mubr.msk.f32.vlgmr.msra.gmra.mrb[6].mxu1 %vm35_vm0, %v2149_v33  ;;  %v3939_v33 = vld [vmem:[%s6807_s1 + $0x708] sm:$0xff] }
 0x7b9   :  { %5420 = vmatpush3.bf16.msra.mxu1 %v5417_v29  ;;  %4818 = vmatprep.mubr.msk.f32.mxu1 %vm35_vm0, %v2332_v36  ;;  %v3925_v29 = vld [vmem:[%s6807_s1 + $0x6b8] sm:$0xff] }
 0x7ba   :  { %5422 = vmatprep.subr.bf16.mxu1 %v5421_v32  ;;  %v5477_v30 = vpack.c.bf16 %v3925_v29, %v3924_v28  ;;  %v3974_v28 = vld [vmem:[%s6807_s1 + $0x7e0] sm:$0xff]  ;;  %v3975_v29 = vld [vmem:[%s6807_s1 + $0x7e8] sm:$0xff] }
 0x7bd   :  { %5424 = vmatpush3.bf16.msra.mxu1 %v5421_v32  ;;  %v3938_v32 = vld [vmem:[%s6807_s1 + $0x700] sm:$0xff] }
 0x7be   :  { %5426 = vmatprep.subr.bf16.mxu1 %v5425_v37  ;;  %v5481_v34 = vpack.c.bf16 %v3939_v33, %v3938_v32  ;;  %v3977_v32 = vld [vmem:[%s6807_s1 + $0x7f8] sm:$0xff] }
 0x7c1   :  { %5428 = vmatpush3.bf16.msra.mxu1 %v5425_v37 }
 0x7c2   :  { %5430 = vmatprep.subr.bf16.mxu1 %v5429_v40 }
 0x7c5   :  { %5432 = vmatpush3.bf16.msra.mxu1 %v5429_v40  ;;  %v5489_v40 = vpack.c.bf16 %v3943_v58, %v3942_v39  ;;  %v3339_v39 = vld [vmem:[%s6810_s4 + $0x8] sm:$0xff] }
 0x7c6   :  { %5482 = vmatprep.subr.bf16.mxu1 %v5481_v34 }
 0x7c8   :  { %4819 = vmatmul.mubr.msk.f32.vlgmr.msra.gmra.mrb[6].mxu1 %vm35_vm0, %v2333_v41 }
 0x7c9   :  { %5484 = vmatpush3.bf16.msra.mxu1 %v5481_v34  ;;  %4894 = vmatprep.mubr.msk.f32.mxu1 %vm35_vm0, %v2755_v43  ;;  %v3962_v34 = vld [vmem:[%s6807_s1 + $0x780] sm:$0xff] }
 0x89b   :  { %v4820_v57 = vpop.f32.mrb[6].mxu1 }
 0x89c   :  { %v2432_v60 = vmul.f32 %v4820_v57, %v3896_v56  ;;  %v2415_v61 = vpop.f32.mrb[7].mxu1 }
 0x89d   :  { %v2431_v62 = vmul.f32 %v3896_v56, %v2415_v61  ;;  %v3933_v61 = vld [vmem:[%s6807_s1 + $0x6d8] sm:$0xff] }
 0x89e   :  { %v2439_v63 = vadd.f32 %v3897_v59, %v2432_v60  ;;  %v3932_v60 = vld [vmem:[%s6807_s1 + $0x6d0] sm:$0xff] }
 0x89f   :  { %v2438_v0 = vadd.f32 %v3897_v59, %v2431_v62  ;;  %v5501_v62 = vpack.c.bf16 %v3933_v61, %v3932_v60  ;;  %v3968_v61 = vld [vmem:[%s6807_s1 + $0x7b0] sm:$0xff] }
 0x8a0   :  { %v2441_v1 = vmax.f32 %v2439_v63, 0.0  ;;  %v2744_v63 = vld [vmem:[#allocation2 + $0xe] sm:$0xff] }
 0x8a1   :  { %v2440_v2 = vmax.f32 %v2438_v0, 0.0 }
 0x8a2   :  { %v2443_v3 = vadd.f32 %v2441_v1, %v2333_v41  ;;  %v3944_v41 = vld [vmem:[%s6807_s1 + $0x730] sm:$0xff]  ;;  %v3934_v1 = vld [vmem:[%s6807_s1 + $0x6e0] sm:$0xff] }
 0x8a3   :  { %v2442_v4 = vadd.f32 %v2440_v2, %v2332_v36  ;;  %v3941_v36 = vld [vmem:[%s6807_s1 + $0x718] sm:$0xff]  ;;  %v5493_v44 = vpack.c.bf16 %v3945_v42, %v3944_v41  ;;  %v3935_v2 = vld [vmem:[%s6807_s1 + $0x6e8] sm:$0xff] }
 0x8a4   :  { %2445 = vst.msk [vmem:[#allocation2 + $0x28] sm:$0xff] %vm35_vm0, %v2443_v3  ;;  %v5485_v37 = vpack.c.bf16 %v3941_v36, %v3940_v35  ;;  %v5505_v3 = vpack.c.bf16 %v3935_v2, %v3934_v1  ;;  %v3963_v35 = vld [vmem:[%s6807_s1 + $0x788] sm:$0xff] }
 0x8a5   :  { %2444 = vst.msk [vmem:[#allocation2 + $0x20] sm:$0xff] %vm35_vm0, %v2442_v4  ;;  %v3936_v4 = vld [vmem:[%s6807_s1 + $0x6f0] sm:$0xff]  ;;  %v5545_v36 = vpack.c.bf16 %v3963_v35, %v3962_v34  ;;  %v3961_v42 = vld [vmem:[%s6809_s3 + $0x9] ss:$0 sm:$0xff] }
 0x8a6   :  { %5486 = vmatprep.subr.bf16.mxu1 %v5485_v37  ;;  %v5509_v6 = vpack.c.bf16 %v3937_v5, %v3936_v4  ;;  %v3983_v1 = vld [vmem:[%s6807_s1 + $0x808] sm:$0xff]  ;;  %v3985_v4 = vld [vmem:[%s6807_s1 + $0x818] sm:$0xff]  ;;  %v3438_v35 = vld [vmem:[%s6811_s6 + $0x10] sm:$0xff] }
 0x8a7   :  { %5488 = vmatpush3.bf16.msra.mxu1 %v5485_v37  ;;  %v3338_v37 = vld [vmem:[%s6810_s4] sm:$0xff] }
 0x8a8   :  { %5490 = vmatprep.subr.bf16.mxu1 %v5489_v40  ;;  %v5577_v58 = vpack.c.bf16 %v3339_v39, %v3338_v37 }
 0x8ab   :  { %v2631_v31 = vld [vmem:[#allocation2 + $0x28] sm:$0xff]  ;;  %5492 = vmatpush3.bf16.msra.mxu1 %v5489_v40 }
 0x8ac   :  { %v2457_v8 = vld [vmem:[#allocation2 + $0x1d] sm:$0xff]  ;;  %v2458_v9 = vld [vmem:[#allocation2 + $0x25] sm:$0xff]  ;;  %5494 = vmatprep.subr.bf16.mxu1 %v5493_v44 }
 0x8ad   :  { %4837 = vmatprep.mubr.msk.f32.mxu0 %vm35_vm0, %v2457_v8  ;;  %v2446_v13 = vld [vmem:[#allocation2 + $0x1a] sm:$0xff]  ;;  %v2447_v23 = vld [vmem:[#allocation2 + $0x22] sm:$0xff] }
 0x8ae   :  { %4838 = vmatmul.mubr.msk.f32.vlgmr.msra.gmra.mrb[8].mxu0 %vm35_vm0, %v2458_v9  ;;  %v2630_v26 = vld [vmem:[#allocation2 + $0x20] sm:$0xff]  ;;  %v3951_v9 = vld [vmem:[%s6807_s1 + $0x748] sm:$0xff] }
 0x8af   :  { %5452 = vmatpush3.bf16.msra.mxu0 %v5449_v55  ;;  %4856 = vmatprep.mubr.msk.f32.mxu0 %vm35_vm0, %v2446_v13  ;;  %v3950_v8 = vld [vmem:[%s6807_s1 + $0x740] sm:$0xff]  ;;  %v2745_v13 = vld [vmem:[#allocation2 + $0x16] sm:$0xff]  ;;  %v3960_v40 = vld [vmem:[%s6808_s2 + $0x9] ss:$0 sm:$0xff] }
 0x8b0   :  { %5454 = vmatprep.subr.bf16.mxu0 %v5453_v10  ;;  %5496 = vmatpush3.bf16.msra.mxu1 %v5493_v44 }
 0x8b1   :  { %5498 = vmatprep.subr.bf16.mxu1 %v5497_v47 }
 0x8b3   :  { %5456 = vmatpush3.bf16.msra.mxu0 %v5453_v10  ;;  %v5513_v10 = vpack.c.bf16 %v3951_v9, %v3950_v8  ;;  %v3986_v8 = vld [vmem:[%s6807_s1 + $0x820] sm:$0xff]  ;;  %v3987_v9 = vld [vmem:[%s6807_s1 + $0x828] sm:$0xff] }
 0x8b4   :  { %5458 = vmatprep.subr.bf16.mxu0 %v5457_v14 }
 0x8b7   :  { %5460 = vmatpush3.bf16.msra.mxu0 %v5457_v14  ;;  %v5517_v14 = vpack.c.bf16 %v3953_v12, %v3952_v11  ;;  %v5569_v11 = vpack.c.bf16 %v3987_v9, %v3986_v8  ;;  %v3988_v12 = vld [vmem:[%s6807_s1 + $0x830] sm:$0xff]  ;;  %v4000_v9 = vld [vmem:[%s6815_s9] ss:$0 sm:$0xff] }
 0x8b8   :  { %5462 = vmatprep.subr.bf16.mxu0 %v5461_v16 }
 0x8bb   :  { %5464 = vmatpush3.bf16.msra.mxu0 %v5461_v16 }
 0x8bc   :  { %5466 = vmatprep.subr.bf16.mxu0 %v5465_v19 }
 0x8be   :  { %4857 = vmatmul.mubr.msk.f32.vlgmr.msra.gmra.mrb[8].mxu0 %vm35_vm0, %v2447_v23  ;;  %v3971_v23 = vld [vmem:[%s6807_s1 + $0x7c8] sm:$0xff] }
 0x8bf   :  { %5468 = vmatpush3.bf16.msra.mxu0 %v5465_v19  ;;  %4875 = vmatprep.mubr.msk.f32.mxu0 %vm35_vm0, %v2630_v26  ;;  %v3957_v19 = vld [vmem:[%s6807_s1 + $0x778] sm:$0xff] }
 0x8c0   :  { %5470 = vmatprep.subr.bf16.mxu0 %v5469_v22  ;;  %v5525_v20 = vpack.c.bf16 %v3957_v19, %v3956_v18  ;;  %v3342_v18 = vld [vmem:[%s6810_s4 + $0x20] sm:$0xff]  ;;  %v3343_v19 = vld [vmem:[%s6810_s4 + $0x28] sm:$0xff] }
 0x8c3   :  { %5472 = vmatpush3.bf16.msra.mxu0 %v5469_v22  ;;  %v3970_v22 = vld [vmem:[%s6807_s1 + $0x7c0] sm:$0xff] }
 0x8c4   :  { %5474 = vmatprep.subr.bf16.mxu0 %v5473_v27  ;;  %v5529_v24 = vpack.c.bf16 %v3971_v23, %v3970_v22  ;;  %v3345_v22 = vld [vmem:[%s6810_s4 + $0x38] sm:$0xff] }
 0x8c7   :  { %5476 = vmatpush3.bf16.msra.mxu0 %v5473_v27 }
 0x8c8   :  { %5478 = vmatprep.subr.bf16.mxu0 %v5477_v30 }
 0x8cb   :  { %5480 = vmatpush3.bf16.msra.mxu0 %v5477_v30  ;;  %v5537_v30 = vpack.c.bf16 %v3975_v29, %v3974_v28  ;;  %v3993_v29 = vld [vmem:[%s6809_s3 + $0xa] ss:$0 sm:$0xff] }
 0x8cc   :  { %5530 = vmatprep.subr.bf16.mxu0 %v5529_v24 }
 0x8ce   :  { %4876 = vmatmul.mubr.msk.f32.vlgmr.msra.gmra.mrb[8].mxu0 %vm35_vm0, %v2631_v31 }
 0x8cf   :  { %5532 = vmatpush3.bf16.msra.mxu0 %v5529_v24  ;;  %v3436_v24 = vld [vmem:[%s6811_s6] sm:$0xff] }
 0x9a1   :  { %v4877_v49 = vpop.f32.mrb[8].mxu0 }
 0x9a2   :  { %v2730_v7 = vmul.f32 %v4877_v49, %v3928_v48  ;;  %v2713_v51 = vpop.f32.mrb[9].mxu0 }
 0x9a3   :  { %v2729_v52 = vmul.f32 %v3928_v48, %v2713_v51  ;;  %v3964_v51 = vld [vmem:[%s6807_s1 + $0x790] sm:$0xff] }
 0x9a4   :  { %v2737_v53 = vadd.f32 %v3929_v50, %v2730_v7 }
 0x9a5   :  { %v2736_v54 = vadd.f32 %v3929_v50, %v2729_v52  ;;  %v3965_v52 = vld [vmem:[%s6807_s1 + $0x798] sm:$0xff] }
 0x9a6   :  { %v2739_v55 = vmax.f32 %v2737_v53, 0.0 }
 0x9a7   :  { %v2738_v56 = vmax.f32 %v2736_v54, 0.0 }
 0x9a8   :  { %v2741_v57 = vadd.f32 %v2739_v55, %v2631_v31  ;;  %v3976_v31 = vld [vmem:[%s6807_s1 + $0x7f0] sm:$0xff]  ;;  %v5549_v55 = vpack.c.bf16 %v3965_v52, %v3964_v51 }
 0x9a9   :  { %v2740_v59 = vadd.f32 %v2738_v56, %v2630_v26  ;;  %v3973_v26 = vld [vmem:[%s6807_s1 + $0x7d8] sm:$0xff]  ;;  %v5541_v33 = vpack.c.bf16 %v3977_v32, %v3976_v31  ;;  %v3966_v56 = vld [vmem:[%s6807_s1 + $0x7a0] sm:$0xff] }
 0x9aa   :  { %2743 = vst.msk [vmem:[#allocation2 + $0x28] sm:$0xff] %vm35_vm0, %v2741_v57  ;;  %v5533_v27 = vpack.c.bf16 %v3973_v26, %v3972_v25  ;;  %v3967_v57 = vld [vmem:[%s6807_s1 + $0x7a8] sm:$0xff] }
 0x9ab   :  { %2742 = vst.msk [vmem:[#allocation2 + $0x20] sm:$0xff] %vm35_vm0, %v2740_v59  ;;  %v5553_v60 = vpack.c.bf16 %v3967_v57, %v3966_v56  ;;  %v3437_v25 = vld [vmem:[%s6811_s6 + $0x8] sm:$0xff] }
 0x9ac   :  { %5534 = vmatprep.subr.bf16.mxu0 %v5533_v27  ;;  %v5593_v26 = vpack.c.bf16 %v3437_v25, %v3436_v24 }
 0x9ad   :  { %5536 = vmatpush3.bf16.msra.mxu0 %v5533_v27  ;;  %v3992_v27 = vld [vmem:[%s6808_s2 + $0xa] ss:$0 sm:$0xff] }
 0x9ae   :  { %5538 = vmatprep.subr.bf16.mxu0 %v5537_v30 }
 0x9b1   :  { %v2929_v21 = vld [vmem:[#allocation2 + $0x28] sm:$0xff]  ;;  %5540 = vmatpush3.bf16.msra.mxu0 %v5537_v30 }
 0x9b2   :  { %v2756_v0 = vld [vmem:[#allocation2 + $0x1f] sm:$0xff]  ;;  %5542 = vmatprep.subr.bf16.mxu0 %v5541_v33 }
 0x9b3   :  { %4895 = vmatmul.mubr.msk.f32.vlgmr.msra.gmra.mrb[8].mxu1 %vm35_vm0, %v2756_v0  ;;  %v2928_v16 = vld [vmem:[#allocation2 + $0x20] sm:$0xff] }
 0x9b4   :  { %5500 = vmatpush3.bf16.msra.mxu1 %v5497_v47  ;;  %4913 = vmatprep.mubr.msk.f32.mxu1 %vm35_vm0, %v2744_v63  ;;  %v3982_v0 = vld [vmem:[%s6807_s1 + $0x800] sm:$0xff] }
 0x9b5   :  { %5502 = vmatprep.subr.bf16.mxu1 %v5501_v62  ;;  %5544 = vmatpush3.bf16.msra.mxu0 %v5541_v33  ;;  %v5561_v2 = vpack.c.bf16 %v3983_v1, %v3982_v0  ;;  %v3997_v1 = vld [vmem:[%s6814_s7] ss:$0 sm:$0xff] }
 0x9b6   :  { %5546 = vmatprep.subr.bf16.mxu0 %v5545_v36 }
 0x9b8   :  { %5504 = vmatpush3.bf16.msra.mxu1 %v5501_v62  ;;  %v3969_v62 = vld [vmem:[%s6807_s1 + $0x7b8] sm:$0xff] }
 0x9b9   :  { %5506 = vmatprep.subr.bf16.mxu1 %v5505_v3  ;;  %v5557_v63 = vpack.c.bf16 %v3969_v62, %v3968_v61  ;;  %v3540_v62 = vld [vmem:[%s6812_s8 + $0x30] sm:$0xff] }
 0x9bc   :  { %5508 = vmatpush3.bf16.msra.mxu1 %v5505_v3  ;;  %v3984_v3 = vld [vmem:[%s6807_s1 + $0x810] sm:$0xff] }
 0x9bd   :  { %5510 = vmatprep.subr.bf16.mxu1 %v5509_v6  ;;  %v5565_v5 = vpack.c.bf16 %v3985_v4, %v3984_v3 }
 0x9c0   :  { %5512 = vmatpush3.bf16.msra.mxu1 %v5509_v6 }
 0x9c1   :  { %5514 = vmatprep.subr.bf16.mxu1 %v5513_v10 }
 0x9c3   :  { %4914 = vmatmul.mubr.msk.f32.vlgmr.msra.gmra.mrb[8].mxu1 %vm35_vm0, %v2745_v13  ;;  %v3989_v13 = vld [vmem:[%s6807_s1 + $0x838] sm:$0xff]  ;;  %s5674_s1 = smov 116  }
 0x9c4   :  { %5516 = vmatpush3.bf16.msra.mxu1 %v5513_v10  ;;  %4932 = vmatprep.mubr.msk.f32.mxu1 %vm35_vm0, %v2928_v16 }
 0x9c5   :  { %5518 = vmatprep.subr.bf16.mxu1 %v5517_v14 }
 0x9c8   :  { %5520 = vmatpush3.bf16.msra.mxu1 %v5517_v14  ;;  %v5573_v14 = vpack.c.bf16 %v3989_v13, %v3988_v12 }
 0x9c9   :  { %5522 = vmatprep.subr.bf16.mxu1 %v5521_v17 }
 0x9cc   :  { %5524 = vmatpush3.bf16.msra.mxu1 %v5521_v17 }
 0x9cd   :  { %5526 = vmatprep.subr.bf16.mxu1 %v5525_v20 }
 0x9d0   :  { %5528 = vmatpush3.bf16.msra.mxu1 %v5525_v20  ;;  %v5585_v20 = vpack.c.bf16 %v3343_v19, %v3342_v18 }
 0x9d1   :  { %5578 = vmatprep.subr.bf16.mxu1 %v5577_v58 }
 0x9d3   :  { %4933 = vmatmul.mubr.msk.f32.vlgmr.msra.gmra.mrb[8].mxu1 %vm35_vm0, %v2929_v21 }
 0x9d4   :  { %5580 = vmatpush3.bf16.msra.mxu1 %v5577_v58 }
 0xaa6   :  { %v4934_v41 = vpop.f32.mrb[8].mxu1 }
 0xaa7   :  { %v3028_v43 = vmul.f32 %v4934_v41, %v3960_v40  ;;  %v3011_v44 = vpop.f32.mrb[9].mxu1  ;;  %v3441_v41 = vld [vmem:[%s6811_s6 + $0x28] sm:$0xff] }
 0xaa8   :  { %v3027_v45 = vmul.f32 %v3960_v40, %v3011_v44  ;;  %v3440_v40 = vld [vmem:[%s6811_s6 + $0x20] sm:$0xff]  ;;  %v3443_v44 = vld [vmem:[%s6811_s6 + $0x38] sm:$0xff] }
 0xaa9   :  { %v3035_v46 = vadd.f32 %v3961_v42, %v3028_v43  ;;  %v3442_v43 = vld [vmem:[%s6811_s6 + $0x30] sm:$0xff] }
 0xaaa   :  { %v3034_v47 = vadd.f32 %v3961_v42, %v3027_v45  ;;  %v5601_v42 = vpack.c.bf16 %v3441_v41, %v3440_v40  ;;  %v5605_v45 = vpack.c.bf16 %v3443_v44, %v3442_v43 }
 0xaab   :  { %v3037_v48 = vmax.f32 %v3035_v46, 0.0  ;;  %v3534_v46 = vld [vmem:[%s6812_s8] sm:$0xff] }
 0xaac   :  { %v3036_v49 = vmax.f32 %v3034_v47, 0.0  ;;  %v3535_v47 = vld [vmem:[%s6812_s8 + $0x8] sm:$0xff] }
 0xaad   :  { %v3039_v50 = vadd.f32 %v3037_v48, %v2929_v21  ;;  %v3344_v21 = vld [vmem:[%s6810_s4 + $0x30] sm:$0xff]  ;;  %v5609_v48 = vpack.c.bf16 %v3535_v47, %v3534_v46 }
 0xaae   :  { %v3038_v7 = vadd.f32 %v3036_v49, %v2928_v16  ;;  %v3341_v16 = vld [vmem:[%s6810_s4 + $0x18] sm:$0xff]  ;;  %v5589_v23 = vpack.c.bf16 %v3345_v22, %v3344_v21  ;;  %v3994_v49 = vld [vmem:[%s6813_s5] ss:$0 sm:$0xff] }
 0xaaf   :  { %3041 = vst.msk [vmem:[#allocation2 + $0x28] sm:$0xff] %vm35_vm0, %v3039_v50  ;;  %v5581_v17 = vpack.c.bf16 %v3341_v16, %v3340_v15 }
 0xab0   :  { %3040 = vst.msk [vmem:[#allocation2 + $0x20] sm:$0xff] %vm35_vm0, %v3038_v7 }
 0xab1   :  { %5582 = vmatprep.subr.bf16.mxu1 %v5581_v17 }
 0xab2   :  { %5584 = vmatpush3.bf16.msra.mxu1 %v5581_v17 }
 0xab3   :  { %5586 = vmatprep.subr.bf16.mxu1 %v5585_v20 }
 0xab6   :  { %v3227_v38 = vld [vmem:[#allocation2 + $0x28] sm:$0xff]  ;;  %5588 = vmatpush3.bf16.msra.mxu1 %v5585_v20 }
 0xab7   :  { %v3053_v53 = vld [vmem:[#allocation2 + $0x1f] sm:$0xff]  ;;  %v3054_v54 = vld [vmem:[#allocation2 + $0x27] sm:$0xff]  ;;  %5590 = vmatprep.subr.bf16.mxu1 %v5589_v23 }
 0xab8   :  { %4951 = vmatprep.mubr.msk.f32.mxu0 %vm35_vm0, %v3053_v53  ;;  %v3042_v59 = vld [vmem:[#allocation2 + $0x1e] sm:$0xff]  ;;  %v3043_v6 = vld [vmem:[#allocation2 + $0x26] sm:$0xff]  ;;  %v3536_v53 = vld [vmem:[%s6812_s8 + $0x10] sm:$0xff] }
 0xab9   :  { %4952 = vmatmul.mubr.msk.f32.vlgmr.msra.gmra.mrb[10].mxu0 %vm35_vm0, %v3054_v54  ;;  %v3226_v10 = vld [vmem:[#allocation2 + $0x20] sm:$0xff]  ;;  %v3537_v54 = vld [vmem:[%s6812_s8 + $0x18] sm:$0xff] }
 0xaba   :  { %5548 = vmatpush3.bf16.msra.mxu0 %v5545_v36  ;;  %4970 = vmatprep.mubr.msk.f32.mxu0 %vm35_vm0, %v3042_v59  ;;  %v3439_v36 = vld [vmem:[%s6811_s6 + $0x18] sm:$0xff]  ;;  %v5613_v57 = vpack.c.bf16 %v3537_v54, %v3536_v53  ;;  %v3538_v59 = vld [vmem:[%s6812_s8 + $0x20] sm:$0xff] }
 0xabb   :  { %5550 = vmatprep.subr.bf16.mxu0 %v5549_v55  ;;  %5592 = vmatpush3.bf16.msra.mxu1 %v5589_v23  ;;  %v5597_v39 = vpack.c.bf16 %v3439_v36, %v3438_v35 }
 0xabc   :  { %5594 = vmatprep.subr.bf16.mxu1 %v5593_v26 }
 0xabe   :  { %5552 = vmatpush3.bf16.msra.mxu0 %v5549_v55 }
 0xabf   :  { %5554 = vmatprep.subr.bf16.mxu0 %v5553_v60 }
 0xac2   :  { %5556 = vmatpush3.bf16.msra.mxu0 %v5553_v60  ;;  %v3539_v60 = vld [vmem:[%s6812_s8 + $0x28] sm:$0xff] }
 0xac3   :  { %5558 = vmatprep.subr.bf16.mxu0 %v5557_v63  ;;  %v5617_v61 = vpack.c.bf16 %v3539_v60, %v3538_v59 }
 0xac6   :  { %5560 = vmatpush3.bf16.msra.mxu0 %v5557_v63  ;;  %v3541_v63 = vld [vmem:[%s6812_s8 + $0x38] sm:$0xff] }
 0xac7   :  { %5562 = vmatprep.subr.bf16.mxu0 %v5561_v2  ;;  %v5621_v0 = vpack.c.bf16 %v3541_v63, %v3540_v62 }
 0xac9   :  { %4971 = vmatmul.mubr.msk.f32.vlgmr.msra.gmra.mrb[10].mxu0 %vm35_vm0, %v3043_v6 }
 0xaca   :  { %5564 = vmatpush3.bf16.msra.mxu0 %v5561_v2  ;;  %4989 = vmatprep.mubr.msk.f32.mxu0 %vm35_vm0, %v3226_v10 }
 0xacb   :  { %5566 = vmatprep.subr.bf16.mxu0 %v5565_v5 }
 0xace   :  { %5568 = vmatpush3.bf16.msra.mxu0 %v5565_v5 }
 0xacf   :  { %5570 = vmatprep.subr.bf16.mxu0 %v5569_v11 }
 0xad2   :  { %5572 = vmatpush3.bf16.msra.mxu0 %v5569_v11 }
 0xad3   :  { %5574 = vmatprep.subr.bf16.mxu0 %v5573_v14 }
 0xad6   :  { %5576 = vmatpush3.bf16.msra.mxu0 %v5573_v14 }
 0xad9   :  { %4990 = vmatmul.mubr.msk.f32.vlgmr.msra.gmra.mrb[10].mxu0 %vm35_vm0, %v3227_v38 }
 0xbac   :  { %v4991_v28 = vpop.f32.mrb[10].mxu0 }
 0xbad   :  { %v3326_v30 = vmul.f32 %v4991_v28, %v3992_v27  ;;  %v3309_v31 = vpop.f32.mrb[11].mxu0 }
 0xbae   :  { %v3325_v32 = vmul.f32 %v3992_v27, %v3309_v31 }
 0xbaf   :  { %v3333_v33 = vadd.f32 %v3993_v29, %v3326_v30 }
 0xbb0   :  { %v3332_v34 = vadd.f32 %v3993_v29, %v3325_v32 }
 0xbb1   :  { %3335 = vst.msk [vmem:[#allocation2 + $0x28] sm:$0xff] %vm35_vm0, %v3333_v33 }
 0xbb2   :  { %3334 = vst.msk [vmem:[#allocation2 + $0x20] sm:$0xff] %vm35_vm0, %v3332_v34 }
 0xbb8   :  { %v3337_v58 = vld [vmem:[#allocation2 + $0x28] sm:$0xff] }
 0xbb9   :  { %v3336_v37 = vld [vmem:[#allocation2 + $0x20] sm:$0xff] }
 0xbba   :  { %5008 = vmatprep.mubr.msk.f32.mxu1 %vm35_vm0, %v3336_v37 }
 0xbbb   :  { %5009 = vmatmul.mubr.msk.f32.vlgmr.msra.gmra.mrb[10].mxu1 %vm35_vm0, %v3337_v58 }
 0xbbc   :  { %5596 = vmatpush3.bf16.msra.mxu1 %v5593_v26 }
 0xbbd   :  { %5598 = vmatprep.subr.bf16.mxu1 %v5597_v39 }
 0xbc0   :  { %5600 = vmatpush3.bf16.msra.mxu1 %v5597_v39 }
 0xbc1   :  { %5602 = vmatprep.subr.bf16.mxu1 %v5601_v42 }
 0xbc4   :  { %5604 = vmatpush3.bf16.msra.mxu1 %v5601_v42 }
 0xbc5   :  { %5606 = vmatprep.subr.bf16.mxu1 %v5605_v45 }
 0xbc8   :  { %5608 = vmatpush3.bf16.msra.mxu1 %v5605_v45 }
 0xbc9   :  { %5610 = vmatprep.subr.bf16.mxu1 %v5609_v48 }
 0xc8e   :  { %v5010_v50 = vpop.f32.mrb[10].mxu1 }
 0xc8f   :  { %v3431_v7 = vadd.f32 %v5010_v50, %v3994_v49  ;;  %v3425_v51 = vpop.f32.mrb[11].mxu1 }
 0xc90   :  { %v3426_v52 = vadd.f32 %v3994_v49, %v3425_v51 }
 0xc91   :  { %v3435_v56 = vmax.f32 %v3431_v7, 0.0 }
 0xc92   :  { %v3434_v55 = vmax.f32 %v3426_v52, 0.0 }
 0xc94   :  { %5027 = vmatprep.mubr.msk.f32.mxu1 %vm35_vm0, %v3434_v55 }
 0xc95   :  { %5028 = vmatmul.mubr.msk.f32.vlgmr.msra.gmra.mrb[12].mxu1 %vm35_vm0, %v3435_v56 }
 0xc96   :  { %5612 = vmatpush3.bf16.msra.mxu1 %v5609_v48 }
 0xc97   :  { %5614 = vmatprep.subr.bf16.mxu1 %v5613_v57 }
 0xc9a   :  { %5616 = vmatpush3.bf16.msra.mxu1 %v5613_v57 }
 0xc9b   :  { %5618 = vmatprep.subr.bf16.mxu1 %v5617_v61 }
 0xc9e   :  { %5620 = vmatpush3.bf16.msra.mxu1 %v5617_v61 }
 0xc9f   :  { %5622 = vmatprep.subr.bf16.mxu1 %v5621_v0 }
 0xca2   :  { %5624 = vmatpush3.bf16.msra.mxu1 %v5621_v0 }
 0xd68   :  { %v5029_v2 = vpop.f32.mrb[12].mxu1 }
 0xd69   :  { %v3529_v3 = vadd.f32 %v5029_v2, %v3997_v1  ;;  %v3523_v4 = vpop.f32.mrb[13].mxu1 }
 0xd6a   :  { %v3524_v5 = vadd.f32 %v3997_v1, %v3523_v4 }
 0xd6b   :  { %v3533_v8 = vmax.f32 %v3529_v3, 0.0 }
 0xd6c   :  { %v3532_v6 = vmax.f32 %v3524_v5, 0.0 }
 0xd6e   :  { %5046 = vmatprep.mubr.msk.f32.mxu1 %vm35_vm0, %v3532_v6 }
 0xd6f   :  { %5047 = vmatmul.mubr.msk.f32.vlgmr.msra.gmra.mrb[14].mxu1 %vm35_vm0, %v3533_v8 }
 0xe42   :  { %v5048_v10 = vpop.f32.mrb[14].mxu1 }
 0xe43   :  { %v3627_v11 = vadd.f32 %v5048_v10, %v4000_v9  ;;  %v3621_v12 = vpop.f32.mrb[15].mxu1 }
 0xe44   :  { %v3622_v13 = vadd.f32 %v4000_v9, %v3621_v12 }
 0xe45   :  { %3632 = vst.msk [vmem:[%s6816_s10 + $0x8] sm:$0xff] %vm3630_vm5, %v3627_v11 }
 0xe46   :  { %3631 = vst.msk [vmem:[%s6816_s10] sm:$0xff] %vm3630_vm5, %v3622_v13  ;;  %3635 = vrot.lane.b32.xlu1 %v3622_v13, %s5674_s1 }
 0xe4a   :  { %3637 = vrot.lane.b32.xlu1 %v3627_v11, %s5674_s1 }
 0xeb8   :  { %v3636_v14 = vpop.permute.xlu1 %3635 }
 0xeb9   :  { %4003 = vst.msk [vmem:[%s6816_s10 + $0x10] sm:$0xff] %vm3630_vm5, %v3636_v14 }
 0xebc   :  { %v3638_v38 = vpop.permute.xlu1 %3637 }
 0xebd   :  { %4004 = vst.msk [vmem:[%s6816_s10 + $0x18] sm:$0xff] %vm3630_vm5, %v3638_v38 }

</bundles_post_ra>
